<compile_context>
chip_gen: v7x
topology: tpu7x:2x2x1
jax: 0.10.0
libtpu: 0.0.40
codegen_flags: <defaults>
</compile_context>

<pallas_src>
import math
import functools

import jax
import jax.numpy as jnp
from jax.experimental import pallas as pl
from jax.experimental.pallas import tpu as pltpu

# Large-negative additive sentinel for masked positions. Safer than f32 min
# (which rounds to -inf in bf16); exp() of it still underflows to exactly 0.
NEG_BIG = -1.0e30
MIN_VALUE = float(jnp.finfo(jnp.float32).min)  # used only by the reference


# ----------------------------------------------------------------------------
# Kernel: one (batch, q_tile) grid step.
#   q_ref   (Tq, Dm)  bf16        k_ref/v_ref (Lk, Dm) bf16
#   bias_ref(Tq|1,Lk) bf16        (only in the masked variant)
#   wq/wk   (Dm, H*dk) bf16       wv (Dm, H*dv) bf16    wfc (H*dv, Dm) bf16
#   bq/bk   (1, H*dk)  f32        bv (1, H*dv)  f32     bfc (1, Dm)    f32
#   out_ref (Tq, Dm)  f32         attn_ref (H, Tq, Lk)
#   kh_ref  (Lk, H*dk) bf16 scratch   vh_ref (Lk, H*dv) bf16 scratch
#   ctx_ref (Tq, H*dv) f32  scratch
# ----------------------------------------------------------------------------
def _mha_fwd_kernel(*refs, n_head, d_k, d_v, has_mask):
    if has_mask:
        (q_ref, k_ref, v_ref, bias_ref,
         wq_ref, wk_ref, wv_ref, wfc_ref,
         bq_ref, bk_ref, bv_ref, bfc_ref,
         out_ref, attn_ref,
         kh_ref, vh_ref, ctx_ref) = refs
    else:
        bias_ref = None
        (q_ref, k_ref, v_ref,
         wq_ref, wk_ref, wv_ref, wfc_ref,
         bq_ref, bk_ref, bv_ref, bfc_ref,
         out_ref, attn_ref,
         kh_ref, vh_ref, ctx_ref) = refs

    qi = pl.program_id(1)

    # K/V projections for ALL heads at once (lane-dense, K = d_model), computed
    # once per batch (the q-tile axis is the inner, sequential grid axis) and
    # kept resident in bf16 VMEM scratch for the rest of this batch.
    @pl.when(qi == 0)
    def _():
        kh_ref[...] = (jnp.dot(k_ref[...], wk_ref[...],
                               preferred_element_type=jnp.float32)
                       + bk_ref[...]).astype(jnp.bfloat16)
        vh_ref[...] = (jnp.dot(v_ref[...], wv_ref[...],
                               preferred_element_type=jnp.float32)
                       + bv_ref[...]).astype(jnp.bfloat16)

    # Q projection for all heads of this q tile. 1/sqrt(d_k) is already folded
    # into wq/bq in the wrapper, so no in-kernel score scaling is needed.
    qh_all = (jnp.dot(q_ref[...], wq_ref[...],
                      preferred_element_type=jnp.float32)
              + bq_ref[...]).astype(jnp.bfloat16)               # (Tq, H*dk)

    if has_mask:
        bias = bias_ref[...].astype(jnp.float32)                # (Tq|1, Lk)

    # Per-head attention. Only one head's (Tq, Lk) score/prob matrix is live at
    # a time; each head's context goes into its column slab of ctx_ref so the
    # output projection below is a single dense K = H*dv matmul.
    for h in range(n_head):
        qh = qh_all[:, h * d_k:(h + 1) * d_k]                   # (Tq, dk) bf16
        kh = kh_ref[:, h * d_k:(h + 1) * d_k]                   # (Lk, dk) bf16
        # q @ k^T via dot_general contracting the last dims (transposed-RHS
        # MXU path; no materialized transpose of kh).
        s = jax.lax.dot_general(
            qh, kh, dimension_numbers=(((1,), (1,)), ((), ())),
            preferred_element_type=jnp.float32)                 # (Tq, Lk) f32
        if has_mask:
            s = s + bias
        # Softmax in f32; EUP approx reciprocal instead of a VALU divide.
        s = s - jnp.max(s, axis=-1, keepdims=True)
        p = jnp.exp(s)
        p = p * pl.reciprocal(jnp.sum(p, axis=-1, keepdims=True), approx=True)
        attn_ref[h] = p.astype(attn_ref.dtype)

        ctx = jnp.dot(p.astype(jnp.bfloat16),
                      vh_ref[:, h * d_v:(h + 1) * d_v],
                      preferred_element_type=jnp.float32)       # (Tq, dv)
        ctx_ref[:, h * d_v:(h + 1) * d_v] = ctx

    # Single output projection for the whole tile: (Tq, H*dv) @ (H*dv, Dm).
    out_ref[...] = (jnp.dot(ctx_ref[...].astype(jnp.bfloat16), wfc_ref[...],
                            preferred_element_type=jnp.float32)
                    + bfc_ref[...]).astype(out_ref.dtype)


# ----------------------------------------------------------------------------
# Wrapper: mirrors MultiHeadAttention.forward(q, k, v, mask=None).
# ----------------------------------------------------------------------------
def multi_head_attention(q, k, v, params, mask=None, *, n_head, d_k, d_v,
                         q_tile=None, attn_dtype=jnp.float32,
                         vmem_limit_bytes=None):
    N, Lq, Dm = q.shape
    _, Lk, _ = k.shape
    assert k.shape == (N, Lk, Dm) and v.shape == (N, Lk, Dm)

    # Query-tile size: bounds the (Tq, Lk) score/prob/attn working set so it
    # fits VMEM (mandatory on v7x's 64 MiB at long sequences). Tq must divide
    # Lq and be a multiple of 8 unless it equals Lq.
    if q_tile is None:
        q_tile = Lq if Lq <= 256 else 256
    assert Lq % q_tile == 0, "q_tile must divide len_q"
    assert q_tile == Lq or q_tile % 8 == 0, "q_tile must be a multiple of 8"
    n_qt = Lq // q_tile

    cdt = jnp.bfloat16
    scale = 1.0 / math.sqrt(d_k)

    # bf16 activations straight from the wrapper (halves q/k/v DMA bytes).
    qx, kx, vx = q.astype(cdt), k.astype(cdt), v.astype(cdt)

    # Full lane-dense weight matrices, bf16, fetched once (constant index maps)
    # and resident in VMEM for the whole grid. 1/sqrt(d_k) folded into Q proj.
    wq = (params["w_qs"] * scale).astype(cdt)                  # (Dm, H*dk)
    wk = params["w_ks"].astype(cdt)                            # (Dm, H*dk)
    wv = params["w_vs"].astype(cdt)                            # (Dm, H*dv)
    wfc = params["w_fc"].astype(cdt)                           # (H*dv, Dm)
    bq = (params["b_qs"] * scale).reshape(1, n_head * d_k).astype(jnp.float32)
    bk = params["b_ks"].reshape(1, n_head * d_k).astype(jnp.float32)
    bv = params["b_vs"].reshape(1, n_head * d_v).astype(jnp.float32)
    bfc = params["b_fc"].reshape(1, Dm).astype(jnp.float32)

    batch_map = lambda b, t: (b, 0, 0)
    tile_map = lambda b, t: (b, t, 0)
    const2_map = lambda b, t: (0, 0)

    in_specs = [
        pl.BlockSpec((None, q_tile, Dm), tile_map),            # q  (bf16)
        pl.BlockSpec((None, Lk, Dm), batch_map),               # k  (bf16)
        pl.BlockSpec((None, Lk, Dm), batch_map),               # v  (bf16)
    ]
    inputs = [qx, kx, vx]

    has_mask = mask is not None
    if has_mask:
        # masked_fill(mask == 0, -big) as an additive bf16 bias. A pure padding
        # mask of shape (N, 1, Lk) is shipped un-broadcast.
        assert mask.shape[0] == N and mask.shape[-1] == Lk
        bias = jnp.where(mask == 0, NEG_BIG, 0.0).astype(cdt)
        if mask.shape[1] == 1:
            in_specs.append(pl.BlockSpec((None, 1, Lk), batch_map))
        else:
            assert mask.shape[1] == Lq
            in_specs.append(pl.BlockSpec((None, q_tile, Lk), tile_map))
        inputs.append(bias)

    in_specs += [
        pl.BlockSpec((Dm, n_head * d_k), const2_map),          # wq (resident)
        pl.BlockSpec((Dm, n_head * d_k), const2_map),          # wk
        pl.BlockSpec((Dm, n_head * d_v), const2_map),          # wv
        pl.BlockSpec((n_head * d_v, Dm), const2_map),          # wfc
        pl.BlockSpec((1, n_head * d_k), const2_map),           # bq
        pl.BlockSpec((1, n_head * d_k), const2_map),           # bk
        pl.BlockSpec((1, n_head * d_v), const2_map),           # bv
        pl.BlockSpec((1, Dm), const2_map),                     # bfc
    ]
    inputs += [wq, wk, wv, wfc, bq, bk, bv, bfc]

    out_specs = [
        pl.BlockSpec((None, q_tile, Dm), tile_map),                     # out
        pl.BlockSpec((None, n_head, q_tile, Lk), lambda b, t: (b, 0, t, 0)),
    ]
    out_shape = [
        jax.ShapeDtypeStruct((N, Lq, Dm), jnp.float32),
        jax.ShapeDtypeStruct((N, n_head, Lq, Lk), attn_dtype),
    ]

    scratch_shapes = [
        pltpu.VMEM((Lk, n_head * d_k), cdt),       # per-batch K projections
        pltpu.VMEM((Lk, n_head * d_v), cdt),       # per-batch V projections
        pltpu.VMEM((q_tile, n_head * d_v), jnp.float32),   # ctx slab for fc
    ]

    kernel = functools.partial(_mha_fwd_kernel, n_head=n_head, d_k=d_k,
                               d_v=d_v, has_mask=has_mask)

    compiler_kwargs = dict(
        # batch axis parallel (megacore split on v7x); q-tile axis sequential
        # ("arbitrary") so the per-batch K/V scratch computed at tile 0 is
        # reused by the remaining q tiles of that batch.
        dimension_semantics=("parallel", "arbitrary"),
    )
    if vmem_limit_bytes is not None:
        # Size this to the real working set + ~20% per chip (v6e/v5e can go to
        # 64-100 MiB; keep <= ~48 MiB on v7x).
        compiler_kwargs["vmem_limit_bytes"] = vmem_limit_bytes

    out, attn = pl.pallas_call(
        kernel,
        out_shape=out_shape,
        grid_spec=pltpu.PrefetchScalarGridSpec(
            num_scalar_prefetch=0,
            grid=(N, n_qt),
            in_specs=in_specs,
            out_specs=out_specs,
            scratch_shapes=scratch_shapes,
        ),
        compiler_params=pltpu.CompilerParams(**compiler_kwargs),
    )(*inputs)
    return out, attn


# ----------------------------------------------------------------------------
# Pure-JAX f32 reference (mirrors the PyTorch module) for self-checking.
# ----------------------------------------------------------------------------
def _mha_reference(q, k, v, params, mask, n_head, d_k, d_v):
    N, Lq, Dm = q.shape
    Lk = k.shape[1]
    qp = (q @ params["w_qs"] + params["b_qs"]).reshape(N, Lq, n_head, d_k).transpose(0, 2, 1, 3)
    kp = (k @ params["w_ks"] + params["b_ks"]).reshape(N, Lk, n_head, d_k).transpose(0, 2, 1, 3)
    vp = (v @ params["w_vs"] + params["b_vs"]).reshape(N, Lk, n_head, d_v).transpose(0, 2, 1, 3)
    s = jnp.einsum("bhqd,bhkd->bhqk", qp, kp) / math.sqrt(d_k)
    if mask is not None:
        s = jnp.where(mask[:, None, :, :] == 0, MIN_VALUE, s)
    attn = jax.nn.softmax(s, axis=-1)
    ctx = jnp.einsum("bhqk,bhkd->bhqd", attn, vp)
    ctx = ctx.transpose(0, 2, 1, 3).reshape(N, Lq, n_head * d_v)
    out = ctx @ params["w_fc"] + params["b_fc"]
    return out, attn


# ----------------------------------------------------------------------------
# Deterministic parameter init (nn.Linear equivalents, (in, out) layout).
# ----------------------------------------------------------------------------
def init_params(key, d_model, n_head, d_k, d_v):
    ks = jax.random.split(key, 8)

    def lin_w(kk, fan_in, fan_out):
        return jax.random.normal(kk, (fan_in, fan_out), jnp.float32) / math.sqrt(fan_in)

    def lin_b(kk, fan_out):
        return 0.1 * jax.random.normal(kk, (fan_out,), jnp.float32)

    return {
        "w_qs": lin_w(ks[0], d_model, n_head * d_k),
        "b_qs": lin_b(ks[1], n_head * d_k),
        "w_ks": lin_w(ks[2], d_model, n_head * d_k),
        "b_ks": lin_b(ks[3], n_head * d_k),
        "w_vs": lin_w(ks[4], d_model, n_head * d_v),
        "b_vs": lin_b(ks[5], n_head * d_v),
        "w_fc": lin_w(ks[6], n_head * d_v, d_model),
        "b_fc": lin_b(ks[7], d_model),
    }


if __name__ == "__main__":
    key = jax.random.PRNGKey(0)

    sz_b, len_q, d_model = 2, 8, 32
    n_head, d_k, d_v = 4, 8, 8

    kq, kk_, kv_, kp = jax.random.split(key, 4)
    q = jax.random.normal(kq, (sz_b, len_q, d_model), jnp.float32)
    k = jax.random.normal(kk_, (sz_b, len_q, d_model), jnp.float32)
    v = jax.random.normal(kv_, (sz_b, len_q, d_model), jnp.float32)
    params = init_params(kp, d_model, n_head, d_k, d_v)

    # --- 1) mask=None (specialized kernel without a bias input) --------------
    out, attn = multi_head_attention(q, k, v, params, mask=None,
                                     n_head=n_head, d_k=d_k, d_v=d_v)
    jax.block_until_ready(out)
    jax.block_until_ready(attn)
    assert out.shape == (sz_b, len_q, d_model)
    assert attn.shape == (sz_b, n_head, len_q, len_q)
    ref_out, ref_attn = _mha_reference(q, k, v, params, None, n_head, d_k, d_v)
    assert jnp.allclose(attn, ref_attn, atol=5e-2, rtol=5e-2)
    assert jnp.allclose(out, ref_out, atol=1e-1, rtol=1e-1)

    # --- 2) full (b, lq, lk) mask --------------------------------------------
    mask = jnp.ones((sz_b, len_q, len_q), jnp.int32)
    mask = mask.at[1, :, -2:].set(0)   # last 2 key positions of batch 1 masked
    out_m, attn_m = multi_head_attention(q, k, v, params, mask=mask,
                                         n_head=n_head, d_k=d_k, d_v=d_v)
    jax.block_until_ready(out_m)
    ref_out_m, ref_attn_m = _mha_reference(q, k, v, params, mask, n_head, d_k, d_v)
    assert jnp.all(attn_m[1, :, :, -2:] < 1e-6)
    assert jnp.allclose(attn_m, ref_attn_m, atol=5e-2, rtol=5e-2)
    assert jnp.allclose(out_m, ref_out_m, atol=1e-1, rtol=1e-1)

    # --- 3) padding mask shipped un-broadcast as (b, 1, lk) -------------------
    pad_mask = jnp.ones((sz_b, 1, len_q), jnp.int32).at[0, :, -3:].set(0)
    out_p, attn_p = multi_head_attention(q, k, v, params, mask=pad_mask,
                                         n_head=n_head, d_k=d_k, d_v=d_v)
    jax.block_until_ready(out_p)
    ref_out_p, ref_attn_p = _mha_reference(q, k, v, params, pad_mask, n_head, d_k, d_v)
    assert jnp.all(attn_p[0, :, :, -3:] < 1e-6)
    assert jnp.allclose(attn_p, ref_attn_p, atol=5e-2, rtol=5e-2)
    assert jnp.allclose(out_p, ref_out_p, atol=1e-1, rtol=1e-1)

    # --- 4) q-tiled path (len_q=16, Tq=8) with bf16 attention output ----------
    len_q2 = 16
    kq2, kk2, kv2 = jax.random.split(jax.random.PRNGKey(1), 3)
    q2 = jax.random.normal(kq2, (sz_b, len_q2, d_model), jnp.float32)
    k2 = jax.random.normal(kk2, (sz_b, len_q2, d_model), jnp.float32)
    v2 = jax.random.normal(kv2, (sz_b, len_q2, d_model), jnp.float32)
    out2, attn2 = multi_head_attention(q2, k2, v2, params, mask=None,
                                       n_head=n_head, d_k=d_k, d_v=d_v,
                                       q_tile=8, attn_dtype=jnp.bfloat16)
    jax.block_until_ready(out2)
    ref_out2, ref_attn2 = _mha_reference(q2, k2, v2, params, None, n_head, d_k, d_v)
    assert attn2.dtype == jnp.bfloat16
    assert jnp.allclose(attn2.astype(jnp.float32), ref_attn2, atol=5e-2, rtol=5e-2)
    assert jnp.allclose(out2, ref_out2, atol=1e-1, rtol=1e-1)

    print("KERNEL_OK")
</pallas_src>

<mosaic_0001>
module attributes {stable_mosaic.version = 11 : i64} {
  func.func @_mha_fwd_kernel(%arg0: i32, %arg1: i32, %arg2: memref<1x8x32xbf16, #tpu.memory_space<vmem>>, %arg3: memref<1x8x32xbf16, #tpu.memory_space<vmem>>, %arg4: memref<1x8x32xbf16, #tpu.memory_space<vmem>>, %arg5: memref<32x32xbf16, #tpu.memory_space<vmem>>, %arg6: memref<32x32xbf16, #tpu.memory_space<vmem>>, %arg7: memref<32x32xbf16, #tpu.memory_space<vmem>>, %arg8: memref<32x32xbf16, #tpu.memory_space<vmem>>, %arg9: memref<1x32xf32, #tpu.memory_space<vmem>>, %arg10: memref<1x32xf32, #tpu.memory_space<vmem>>, %arg11: memref<1x32xf32, #tpu.memory_space<vmem>>, %arg12: memref<1x32xf32, #tpu.memory_space<vmem>>, %arg13: memref<1x8x32xf32, #tpu.memory_space<vmem>>, %arg14: memref<1x4x8x8xf32, #tpu.memory_space<vmem>>, %arg15: memref<8x32xbf16, #tpu.memory_space<vmem>>, %arg16: memref<8x32xbf16, #tpu.memory_space<vmem>>, %arg17: memref<8x32xf32, #tpu.memory_space<vmem>>) attributes {dimension_semantics = [#tpu.dimension_semantics<parallel>, #tpu.dimension_semantics<arbitrary>], iteration_bounds = array<i64: 2, 1>, scalar_prefetch = 0 : i64, scratch_operands = 3 : i64, tpu.core_type = #tpu.core_type<tc>, window_params = [{transform_indices = @transform_0, window_bounds = array<i64: 1, 8, 32>}, {transform_indices = @transform_1, window_bounds = array<i64: 1, 8, 32>}, {transform_indices = @transform_2, window_bounds = array<i64: 1, 8, 32>}, {pipeline_mode = #tpu.pipeline_mode<synchronous>, transform_indices = @transform_3, window_bounds = array<i64: 32, 32>}, {pipeline_mode = #tpu.pipeline_mode<synchronous>, transform_indices = @transform_4, window_bounds = array<i64: 32, 32>}, {pipeline_mode = #tpu.pipeline_mode<synchronous>, transform_indices = @transform_5, window_bounds = array<i64: 32, 32>}, {pipeline_mode = #tpu.pipeline_mode<synchronous>, transform_indices = @transform_6, window_bounds = array<i64: 32, 32>}, {pipeline_mode = #tpu.pipeline_mode<synchronous>, transform_indices = @transform_7, window_bounds = array<i64: 1, 32>}, {pipeline_mode = #tpu.pipeline_mode<synchronous>, transform_indices = @transform_8, window_bounds = array<i64: 1, 32>}, {pipeline_mode = #tpu.pipeline_mode<synchronous>, transform_indices = @transform_9, window_bounds = array<i64: 1, 32>}, {pipeline_mode = #tpu.pipeline_mode<synchronous>, transform_indices = @transform_10, window_bounds = array<i64: 1, 32>}, {transform_indices = @transform_11, window_bounds = array<i64: 1, 8, 32>}, {transform_indices = @transform_12, window_bounds = array<i64: 1, 4, 8, 8>}]} {
    %c0_i32 = arith.constant 0 : i32
    %0 = arith.cmpi eq, %arg1, %c0_i32 : i32
    %1 = arith.extui %0 : i1 to i32
    %c0_i32_0 = arith.constant 0 : i32
    %2 = arith.cmpi ne, %1, %c0_i32_0 : i32
    scf.if %2 {
      %c0_67 = arith.constant 0 : index
      %c0_68 = arith.constant 0 : index
      %c0_69 = arith.constant 0 : index
      %101 = vector.load %arg3[%c0_67, %c0_68, %c0_69] : memref<1x8x32xbf16, #tpu.memory_space<vmem>>, vector<1x8x32xbf16>
      %102 = vector.shape_cast %101 : vector<1x8x32xbf16> to vector<8x32xbf16>
      %c0_70 = arith.constant 0 : index
      %c0_71 = arith.constant 0 : index
      %103 = vector.load %arg6[%c0_70, %c0_71] : memref<32x32xbf16, #tpu.memory_space<vmem>>, vector<32x32xbf16>
      %cst_72 = arith.constant dense<0.000000e+00> : vector<8x32xf32>
      %104 = tpu.matmul %102, %103, %cst_72 {dimension_numbers = #tpu.dot_dimension_numbers<[1], [0], [0], [1], [0, 0, 1, 1], [], []>} : vector<8x32xbf16>, vector<32x32xbf16>, vector<8x32xf32> -> vector<8x32xf32>
      %c0_73 = arith.constant 0 : index
      %c0_74 = arith.constant 0 : index
      %105 = vector.load %arg10[%c0_73, %c0_74] : memref<1x32xf32, #tpu.memory_space<vmem>>, vector<1x32xf32>
      %106 = vector.broadcast %105 : vector<1x32xf32> to vector<8x32xf32>
      %107 = arith.addf %104, %106 : vector<8x32xf32>
      %108 = arith.truncf %107 : vector<8x32xf32> to vector<8x32xbf16>
      %c0_75 = arith.constant 0 : index
      %c0_76 = arith.constant 0 : index
      %109 = vector.load %arg15[%c0_75, %c0_76] : memref<8x32xbf16, #tpu.memory_space<vmem>>, vector<8x32xbf16>
      tpu.vector_store %arg15[%c0_75, %c0_76], %108 {strides = array<i32>} : memref<8x32xbf16, #tpu.memory_space<vmem>>, vector<8x32xbf16>,
      %c0_77 = arith.constant 0 : index
      %c0_78 = arith.constant 0 : index
      %c0_79 = arith.constant 0 : index
      %110 = vector.load %arg4[%c0_77, %c0_78, %c0_79] : memref<1x8x32xbf16, #tpu.memory_space<vmem>>, vector<1x8x32xbf16>
      %111 = vector.shape_cast %110 : vector<1x8x32xbf16> to vector<8x32xbf16>
      %c0_80 = arith.constant 0 : index
      %c0_81 = arith.constant 0 : index
      %112 = vector.load %arg7[%c0_80, %c0_81] : memref<32x32xbf16, #tpu.memory_space<vmem>>, vector<32x32xbf16>
      %cst_82 = arith.constant dense<0.000000e+00> : vector<8x32xf32>
      %113 = tpu.matmul %111, %112, %cst_82 {dimension_numbers = #tpu.dot_dimension_numbers<[1], [0], [0], [1], [0, 0, 1, 1], [], []>} : vector<8x32xbf16>, vector<32x32xbf16>, vector<8x32xf32> -> vector<8x32xf32>
      %c0_83 = arith.constant 0 : index
      %c0_84 = arith.constant 0 : index
      %114 = vector.load %arg11[%c0_83, %c0_84] : memref<1x32xf32, #tpu.memory_space<vmem>>, vector<1x32xf32>
      %115 = vector.broadcast %114 : vector<1x32xf32> to vector<8x32xf32>
      %116 = arith.addf %113, %115 : vector<8x32xf32>
      %117 = arith.truncf %116 : vector<8x32xf32> to vector<8x32xbf16>
      %c0_85 = arith.constant 0 : index
      %c0_86 = arith.constant 0 : index
      %118 = vector.load %arg16[%c0_85, %c0_86] : memref<8x32xbf16, #tpu.memory_space<vmem>>, vector<8x32xbf16>
      tpu.vector_store %arg16[%c0_85, %c0_86], %117 {strides = array<i32>} : memref<8x32xbf16, #tpu.memory_space<vmem>>, vector<8x32xbf16>,
    } else {
    }
    %c0 = arith.constant 0 : index
    %c0_1 = arith.constant 0 : index
    %c0_2 = arith.constant 0 : index
    %3 = vector.load %arg2[%c0, %c0_1, %c0_2] : memref<1x8x32xbf16, #tpu.memory_space<vmem>>, vector<1x8x32xbf16>
    %4 = vector.shape_cast %3 : vector<1x8x32xbf16> to vector<8x32xbf16>
    %c0_3 = arith.constant 0 : index
    %c0_4 = arith.constant 0 : index
    %5 = vector.load %arg5[%c0_3, %c0_4] : memref<32x32xbf16, #tpu.memory_space<vmem>>, vector<32x32xbf16>
    %cst = arith.constant dense<0.000000e+00> : vector<8x32xf32>
    %6 = tpu.matmul %4, %5, %cst {dimension_numbers = #tpu.dot_dimension_numbers<[1], [0], [0], [1], [0, 0, 1, 1], [], []>} : vector<8x32xbf16>, vector<32x32xbf16>, vector<8x32xf32> -> vector<8x32xf32>
    %c0_5 = arith.constant 0 : index
    %c0_6 = arith.constant 0 : index
    %7 = vector.load %arg9[%c0_5, %c0_6] : memref<1x32xf32, #tpu.memory_space<vmem>>, vector<1x32xf32>
    %8 = vector.broadcast %7 : vector<1x32xf32> to vector<8x32xf32>
    %9 = arith.addf %6, %8 : vector<8x32xf32>
    %10 = arith.truncf %9 : vector<8x32xf32> to vector<8x32xbf16>
    %11 = vector.extract_strided_slice %10 {offsets = [0, 0], sizes = [8, 8], strides = [1, 1]} : vector<8x32xbf16> to vector<8x8xbf16>
    %c0_7 = arith.constant 0 : index
    %c0_8 = arith.constant 0 : index
    %12 = vector.load %arg15[%c0_7, %c0_8] : memref<8x32xbf16, #tpu.memory_space<vmem>>, vector<8x8xbf16>
    %cst_9 = arith.constant dense<0.000000e+00> : vector<8x8xf32>
    %13 = tpu.matmul %11, %12, %cst_9 {dimension_numbers = #tpu.dot_dimension_numbers<[1], [1], [0], [0], [0, 0, 1, 0], [], []>} : vector<8x8xbf16>, vector<8x8xbf16>, vector<8x8xf32> -> vector<8x8xf32>
    %cst_10 = arith.constant dense<0xFF800000> : vector<8xf32>
    %14 = vector.multi_reduction <maximumf>, %13, %cst_10 [1] : vector<8x8xf32> to vector<8xf32>
    %15 = vector.shape_cast %14 : vector<8xf32> to vector<8x1xf32>
    %16 = vector.broadcast %15 : vector<8x1xf32> to vector<8x8xf32>
    %17 = arith.subf %13, %16 : vector<8x8xf32>
    %18 = math.exp %17 : vector<8x8xf32>
    %cst_11 = arith.constant dense<0.000000e+00> : vector<8xf32>
    %19 = vector.multi_reduction <add>, %18, %cst_11 [1] : vector<8x8xf32> to vector<8xf32>
    %20 = vector.shape_cast %19 : vector<8xf32> to vector<8x1xf32>
    %21 = tpu.reciprocal %20 {approx = true} : vector<8x1xf32> -> vector<8x1xf32>
    %22 = vector.broadcast %21 : vector<8x1xf32> to vector<8x8xf32>
    %23 = arith.mulf %18, %22 : vector<8x8xf32>
    %c0_12 = arith.constant 0 : index
    %c0_13 = arith.constant 0 : index
    %c0_14 = arith.constant 0 : index
    %c0_15 = arith.constant 0 : index
    %24 = vector.load %arg14[%c0_12, %c0_13, %c0_14, %c0_15] : memref<1x4x8x8xf32, #tpu.memory_space<vmem>>, vector<1x1x8x8xf32>
    %25 = vector.shape_cast %24 : vector<1x1x8x8xf32> to vector<8x8xf32>
    %26 = vector.shape_cast %23 : vector<8x8xf32> to vector<1x1x8x8xf32>
    tpu.vector_store %arg14[%c0_12, %c0_13, %c0_14, %c0_15], %26 {strides = array<i32>} : memref<1x4x8x8xf32, #tpu.memory_space<vmem>>, vector<1x1x8x8xf32>,
    %27 = arith.truncf %23 : vector<8x8xf32> to vector<8x8xbf16>
    %c0_16 = arith.constant 0 : index
    %c0_17 = arith.constant 0 : index
    %28 = vector.load %arg16[%c0_16, %c0_17] : memref<8x32xbf16, #tpu.memory_space<vmem>>, vector<8x8xbf16>
    %cst_18 = arith.constant dense<0.000000e+00> : vector<8x8xf32>
    %29 = tpu.matmul %27, %28, %cst_18 {dimension_numbers = #tpu.dot_dimension_numbers<[1], [0], [0], [1], [0, 0, 1, 1], [], []>} : vector<8x8xbf16>, vector<8x8xbf16>, vector<8x8xf32> -> vector<8x8xf32>
    %c0_19 = arith.constant 0 : index
    %c0_20 = arith.constant 0 : index
    %30 = vector.load %arg17[%c0_19, %c0_20] : memref<8x32xf32, #tpu.memory_space<vmem>>, vector<8x8xf32>
    tpu.vector_store %arg17[%c0_19, %c0_20], %29 {strides = array<i32>} : memref<8x32xf32, #tpu.memory_space<vmem>>, vector<8x8xf32>,
    %31 = vector.extract_strided_slice %10 {offsets = [0, 8], sizes = [8, 8], strides = [1, 1]} : vector<8x32xbf16> to vector<8x8xbf16>
    %c0_21 = arith.constant 0 : index
    %c8 = arith.constant 8 : index
    %32 = vector.load %arg15[%c0_21, %c8] : memref<8x32xbf16, #tpu.memory_space<vmem>>, vector<8x8xbf16>
    %cst_22 = arith.constant dense<0.000000e+00> : vector<8x8xf32>
    %33 = tpu.matmul %31, %32, %cst_22 {dimension_numbers = #tpu.dot_dimension_numbers<[1], [1], [0], [0], [0, 0, 1, 0], [], []>} : vector<8x8xbf16>, vector<8x8xbf16>, vector<8x8xf32> -> vector<8x8xf32>
    %cst_23 = arith.constant dense<0xFF800000> : vector<8xf32>
    %34 = vector.multi_reduction <maximumf>, %33, %cst_23 [1] : vector<8x8xf32> to vector<8xf32>
    %35 = vector.shape_cast %34 : vector<8xf32> to vector<8x1xf32>
    %36 = vector.broadcast %35 : vector<8x1xf32> to vector<8x8xf32>
    %37 = arith.subf %33, %36 : vector<8x8xf32>
    %38 = math.exp %37 : vector<8x8xf32>
    %cst_24 = arith.constant dense<0.000000e+00> : vector<8xf32>
    %39 = vector.multi_reduction <add>, %38, %cst_24 [1] : vector<8x8xf32> to vector<8xf32>
    %40 = vector.shape_cast %39 : vector<8xf32> to vector<8x1xf32>
    %41 = tpu.reciprocal %40 {approx = true} : vector<8x1xf32> -> vector<8x1xf32>
    %42 = vector.broadcast %41 : vector<8x1xf32> to vector<8x8xf32>
    %43 = arith.mulf %38, %42 : vector<8x8xf32>
    %c0_25 = arith.constant 0 : index
    %c1 = arith.constant 1 : index
    %c0_26 = arith.constant 0 : index
    %c0_27 = arith.constant 0 : index
    %44 = vector.load %arg14[%c0_25, %c1, %c0_26, %c0_27] : memref<1x4x8x8xf32, #tpu.memory_space<vmem>>, vector<1x1x8x8xf32>
    %45 = vector.shape_cast %44 : vector<1x1x8x8xf32> to vector<8x8xf32>
    %46 = vector.shape_cast %43 : vector<8x8xf32> to vector<1x1x8x8xf32>
    tpu.vector_store %arg14[%c0_25, %c1, %c0_26, %c0_27], %46 {strides = array<i32>} : memref<1x4x8x8xf32, #tpu.memory_space<vmem>>, vector<1x1x8x8xf32>,
    %47 = arith.truncf %43 : vector<8x8xf32> to vector<8x8xbf16>
    %c0_28 = arith.constant 0 : index
    %c8_29 = arith.constant 8 : index
    %48 = vector.load %arg16[%c0_28, %c8_29] : memref<8x32xbf16, #tpu.memory_space<vmem>>, vector<8x8xbf16>
    %cst_30 = arith.constant dense<0.000000e+00> : vector<8x8xf32>
    %49 = tpu.matmul %47, %48, %cst_30 {dimension_numbers = #tpu.dot_dimension_numbers<[1], [0], [0], [1], [0, 0, 1, 1], [], []>} : vector<8x8xbf16>, vector<8x8xbf16>, vector<8x8xf32> -> vector<8x8xf32>
    %c0_31 = arith.constant 0 : index
    %c8_32 = arith.constant 8 : index
    %50 = vector.load %arg17[%c0_31, %c8_32] : memref<8x32xf32, #tpu.memory_space<vmem>>, vector<8x8xf32>
    tpu.vector_store %arg17[%c0_31, %c8_32], %49 {strides = array<i32>} : memref<8x32xf32, #tpu.memory_space<vmem>>, vector<8x8xf32>,
    %51 = vector.extract_strided_slice %10 {offsets = [0, 16], sizes = [8, 8], strides = [1, 1]} : vector<8x32xbf16> to vector<8x8xbf16>
    %c0_33 = arith.constant 0 : index
    %c16 = arith.constant 16 : index
    %52 = vector.load %arg15[%c0_33, %c16] : memref<8x32xbf16, #tpu.memory_space<vmem>>, vector<8x8xbf16>
    %cst_34 = arith.constant dense<0.000000e+00> : vector<8x8xf32>
    %53 = tpu.matmul %51, %52, %cst_34 {dimension_numbers = #tpu.dot_dimension_numbers<[1], [1], [0], [0], [0, 0, 1, 0], [], []>} : vector<8x8xbf16>, vector<8x8xbf16>, vector<8x8xf32> -> vector<8x8xf32>
    %cst_35 = arith.constant dense<0xFF800000> : vector<8xf32>
    %54 = vector.multi_reduction <maximumf>, %53, %cst_35 [1] : vector<8x8xf32> to vector<8xf32>
    %55 = vector.shape_cast %54 : vector<8xf32> to vector<8x1xf32>
    %56 = vector.broadcast %55 : vector<8x1xf32> to vector<8x8xf32>
    %57 = arith.subf %53, %56 : vector<8x8xf32>
    %58 = math.exp %57 : vector<8x8xf32>
    %cst_36 = arith.constant dense<0.000000e+00> : vector<8xf32>
    %59 = vector.multi_reduction <add>, %58, %cst_36 [1] : vector<8x8xf32> to vector<8xf32>
    %60 = vector.shape_cast %59 : vector<8xf32> to vector<8x1xf32>
    %61 = tpu.reciprocal %60 {approx = true} : vector<8x1xf32> -> vector<8x1xf32>
    %62 = vector.broadcast %61 : vector<8x1xf32> to vector<8x8xf32>
    %63 = arith.mulf %58, %62 : vector<8x8xf32>
    %c0_37 = arith.constant 0 : index
    %c2 = arith.constant 2 : index
    %c0_38 = arith.constant 0 : index
    %c0_39 = arith.constant 0 : index
    %64 = vector.load %arg14[%c0_37, %c2, %c0_38, %c0_39] : memref<1x4x8x8xf32, #tpu.memory_space<vmem>>, vector<1x1x8x8xf32>
    %65 = vector.shape_cast %64 : vector<1x1x8x8xf32> to vector<8x8xf32>
    %66 = vector.shape_cast %63 : vector<8x8xf32> to vector<1x1x8x8xf32>
    tpu.vector_store %arg14[%c0_37, %c2, %c0_38, %c0_39], %66 {strides = array<i32>} : memref<1x4x8x8xf32, #tpu.memory_space<vmem>>, vector<1x1x8x8xf32>,
    %67 = arith.truncf %63 : vector<8x8xf32> to vector<8x8xbf16>
    %c0_40 = arith.constant 0 : index
    %c16_41 = arith.constant 16 : index
    %68 = vector.load %arg16[%c0_40, %c16_41] : memref<8x32xbf16, #tpu.memory_space<vmem>>, vector<8x8xbf16>
    %cst_42 = arith.constant dense<0.000000e+00> : vector<8x8xf32>
    %69 = tpu.matmul %67, %68, %cst_42 {dimension_numbers = #tpu.dot_dimension_numbers<[1], [0], [0], [1], [0, 0, 1, 1], [], []>} : vector<8x8xbf16>, vector<8x8xbf16>, vector<8x8xf32> -> vector<8x8xf32>
    %c0_43 = arith.constant 0 : index
    %c16_44 = arith.constant 16 : index
    %70 = vector.load %arg17[%c0_43, %c16_44] : memref<8x32xf32, #tpu.memory_space<vmem>>, vector<8x8xf32>
    tpu.vector_store %arg17[%c0_43, %c16_44], %69 {strides = array<i32>} : memref<8x32xf32, #tpu.memory_space<vmem>>, vector<8x8xf32>,
    %71 = vector.extract_strided_slice %10 {offsets = [0, 24], sizes = [8, 8], strides = [1, 1]} : vector<8x32xbf16> to vector<8x8xbf16>
    %c0_45 = arith.constant 0 : index
    %c24 = arith.constant 24 : index
    %72 = vector.load %arg15[%c0_45, %c24] : memref<8x32xbf16, #tpu.memory_space<vmem>>, vector<8x8xbf16>
    %cst_46 = arith.constant dense<0.000000e+00> : vector<8x8xf32>
    %73 = tpu.matmul %71, %72, %cst_46 {dimension_numbers = #tpu.dot_dimension_numbers<[1], [1], [0], [0], [0, 0, 1, 0], [], []>} : vector<8x8xbf16>, vector<8x8xbf16>, vector<8x8xf32> -> vector<8x8xf32>
    %cst_47 = arith.constant dense<0xFF800000> : vector<8xf32>
    %74 = vector.multi_reduction <maximumf>, %73, %cst_47 [1] : vector<8x8xf32> to vector<8xf32>
    %75 = vector.shape_cast %74 : vector<8xf32> to vector<8x1xf32>
    %76 = vector.broadcast %75 : vector<8x1xf32> to vector<8x8xf32>
    %77 = arith.subf %73, %76 : vector<8x8xf32>
    %78 = math.exp %77 : vector<8x8xf32>
    %cst_48 = arith.constant dense<0.000000e+00> : vector<8xf32>
    %79 = vector.multi_reduction <add>, %78, %cst_48 [1] : vector<8x8xf32> to vector<8xf32>
    %80 = vector.shape_cast %79 : vector<8xf32> to vector<8x1xf32>
    %81 = tpu.reciprocal %80 {approx = true} : vector<8x1xf32> -> vector<8x1xf32>
    %82 = vector.broadcast %81 : vector<8x1xf32> to vector<8x8xf32>
    %83 = arith.mulf %78, %82 : vector<8x8xf32>
    %c0_49 = arith.constant 0 : index
    %c3 = arith.constant 3 : index
    %c0_50 = arith.constant 0 : index
    %c0_51 = arith.constant 0 : index
    %84 = vector.load %arg14[%c0_49, %c3, %c0_50, %c0_51] : memref<1x4x8x8xf32, #tpu.memory_space<vmem>>, vector<1x1x8x8xf32>
    %85 = vector.shape_cast %84 : vector<1x1x8x8xf32> to vector<8x8xf32>
    %86 = vector.shape_cast %83 : vector<8x8xf32> to vector<1x1x8x8xf32>
    tpu.vector_store %arg14[%c0_49, %c3, %c0_50, %c0_51], %86 {strides = array<i32>} : memref<1x4x8x8xf32, #tpu.memory_space<vmem>>, vector<1x1x8x8xf32>,
    %87 = arith.truncf %83 : vector<8x8xf32> to vector<8x8xbf16>
    %c0_52 = arith.constant 0 : index
    %c24_53 = arith.constant 24 : index
    %88 = vector.load %arg16[%c0_52, %c24_53] : memref<8x32xbf16, #tpu.memory_space<vmem>>, vector<8x8xbf16>
    %cst_54 = arith.constant dense<0.000000e+00> : vector<8x8xf32>
    %89 = tpu.matmul %87, %88, %cst_54 {dimension_numbers = #tpu.dot_dimension_numbers<[1], [0], [0], [1], [0, 0, 1, 1], [], []>} : vector<8x8xbf16>, vector<8x8xbf16>, vector<8x8xf32> -> vector<8x8xf32>
    %c0_55 = arith.constant 0 : index
    %c24_56 = arith.constant 24 : index
    %90 = vector.load %arg17[%c0_55, %c24_56] : memref<8x32xf32, #tpu.memory_space<vmem>>, vector<8x8xf32>
    tpu.vector_store %arg17[%c0_55, %c24_56], %89 {strides = array<i32>} : memref<8x32xf32, #tpu.memory_space<vmem>>, vector<8x8xf32>,
    %c0_57 = arith.constant 0 : index
    %c0_58 = arith.constant 0 : index
    %91 = vector.load %arg17[%c0_57, %c0_58] : memref<8x32xf32, #tpu.memory_space<vmem>>, vector<8x32xf32>
    %92 = arith.truncf %91 : vector<8x32xf32> to vector<8x32xbf16>
    %c0_59 = arith.constant 0 : index
    %c0_60 = arith.constant 0 : index
    %93 = vector.load %arg8[%c0_59, %c0_60] : memref<32x32xbf16, #tpu.memory_space<vmem>>, vector<32x32xbf16>
    %cst_61 = arith.constant dense<0.000000e+00> : vector<8x32xf32>
    %94 = tpu.matmul %92, %93, %cst_61 {dimension_numbers = #tpu.dot_dimension_numbers<[1], [0], [0], [1], [0, 0, 1, 1], [], []>} : vector<8x32xbf16>, vector<32x32xbf16>, vector<8x32xf32> -> vector<8x32xf32>
    %c0_62 = arith.constant 0 : index
    %c0_63 = arith.constant 0 : index
    %95 = vector.load %arg12[%c0_62, %c0_63] : memref<1x32xf32, #tpu.memory_space<vmem>>, vector<1x32xf32>
    %96 = vector.broadcast %95 : vector<1x32xf32> to vector<8x32xf32>
    %97 = arith.addf %94, %96 : vector<8x32xf32>
    %c0_64 = arith.constant 0 : index
    %c0_65 = arith.constant 0 : index
    %c0_66 = arith.constant 0 : index
    %98 = vector.load %arg13[%c0_64, %c0_65, %c0_66] : memref<1x8x32xf32, #tpu.memory_space<vmem>>, vector<1x8x32xf32>
    %99 = vector.shape_cast %98 : vector<1x8x32xf32> to vector<8x32xf32>
    %100 = vector.shape_cast %97 : vector<8x32xf32> to vector<1x8x32xf32>
    tpu.vector_store %arg13[%c0_64, %c0_65, %c0_66], %100 {strides = array<i32>} : memref<1x8x32xf32, #tpu.memory_space<vmem>>, vector<1x8x32xf32>,
    return
  }
  func.func @transform_0(%arg0: i32, %arg1: i32) -> (i32, i32, i32) {
    %c0_i32 = arith.constant 0 : i32
    %c0_i32_0 = arith.constant 0 : i32
    return %arg0, %arg1, %c0_i32 : i32, i32, i32
  }
  func.func @transform_1(%arg0: i32, %arg1: i32) -> (i32, i32, i32) {
    %c0_i32 = arith.constant 0 : i32
    %c0_i32_0 = arith.constant 0 : i32
    %c0_i32_1 = arith.constant 0 : i32
    return %arg0, %c0_i32, %c0_i32_0 : i32, i32, i32
  }
  func.func @transform_2(%arg0: i32, %arg1: i32) -> (i32, i32, i32) {
    %c0_i32 = arith.constant 0 : i32
    %c0_i32_0 = arith.constant 0 : i32
    %c0_i32_1 = arith.constant 0 : i32
    return %arg0, %c0_i32, %c0_i32_0 : i32, i32, i32
  }
  func.func @transform_3(%arg0: i32, %arg1: i32) -> (i32, i32) {
    %c0_i32 = arith.constant 0 : i32
    %c0_i32_0 = arith.constant 0 : i32
    %c0_i32_1 = arith.constant 0 : i32
    return %c0_i32, %c0_i32_0 : i32, i32
  }
  func.func @transform_4(%arg0: i32, %arg1: i32) -> (i32, i32) {
    %c0_i32 = arith.constant 0 : i32
    %c0_i32_0 = arith.constant 0 : i32
    %c0_i32_1 = arith.constant 0 : i32
    return %c0_i32, %c0_i32_0 : i32, i32
  }
  func.func @transform_5(%arg0: i32, %arg1: i32) -> (i32, i32) {
    %c0_i32 = arith.constant 0 : i32
    %c0_i32_0 = arith.constant 0 : i32
    %c0_i32_1 = arith.constant 0 : i32
    return %c0_i32, %c0_i32_0 : i32, i32
  }
  func.func @transform_6(%arg0: i32, %arg1: i32) -> (i32, i32) {
    %c0_i32 = arith.constant 0 : i32
    %c0_i32_0 = arith.constant 0 : i32
    %c0_i32_1 = arith.constant 0 : i32
    return %c0_i32, %c0_i32_0 : i32, i32
  }
  func.func @transform_7(%arg0: i32, %arg1: i32) -> (i32, i32) {
    %c0_i32 = arith.constant 0 : i32
    %c0_i32_0 = arith.constant 0 : i32
    %c0_i32_1 = arith.constant 0 : i32
    return %c0_i32, %c0_i32_0 : i32, i32
  }
  func.func @transform_8(%arg0: i32, %arg1: i32) -> (i32, i32) {
    %c0_i32 = arith.constant 0 : i32
    %c0_i32_0 = arith.constant 0 : i32
    %c0_i32_1 = arith.constant 0 : i32
    return %c0_i32, %c0_i32_0 : i32, i32
  }
  func.func @transform_9(%arg0: i32, %arg1: i32) -> (i32, i32) {
    %c0_i32 = arith.constant 0 : i32
    %c0_i32_0 = arith.constant 0 : i32
    %c0_i32_1 = arith.constant 0 : i32
    return %c0_i32, %c0_i32_0 : i32, i32
  }
  func.func @transform_10(%arg0: i32, %arg1: i32) -> (i32, i32) {
    %c0_i32 = arith.constant 0 : i32
    %c0_i32_0 = arith.constant 0 : i32
    %c0_i32_1 = arith.constant 0 : i32
    return %c0_i32, %c0_i32_0 : i32, i32
  }
  func.func @transform_11(%arg0: i32, %arg1: i32) -> (i32, i32, i32) {
    %c0_i32 = arith.constant 0 : i32
    %c0_i32_0 = arith.constant 0 : i32
    return %arg0, %arg1, %c0_i32 : i32, i32, i32
  }
  func.func @transform_12(%arg0: i32, %arg1: i32) -> (i32, i32, i32, i32) {
    %c0_i32 = arith.constant 0 : i32
    %c0_i32_0 = arith.constant 0 : i32
    %c0_i32_1 = arith.constant 0 : i32
    return %arg0, %c0_i32, %arg1, %c0_i32_0 : i32, i32, i32, i32
  }
}

</mosaic_0001>

<bundles_post_ra>
// kernel: tpu_custom_call.1
= control target key start
LH: loop header
LB: loop body
LE: loop exit
PB: predicated region body
PF: predicated region fallthrough
CT: control target
= control target key end

     0   :  { %s2764_s0 = inlined_call_operand.hbm [shape: bf16[2,8,32], index: 0, kind: input, shape index: {}]   ;;  %s2765_s1 = inlined_call_operand.hbm [shape: bf16[2,8,32], index: 1, kind: input, shape index: {}]   ;;  %s2766_s2 = inlined_call_operand.hbm [shape: bf16[2,8,32], index: 2, kind: input, shape index: {}]   ;;  %s2767_s3 = inlined_call_operand.hbm [shape: bf16[32,32], index: 3, kind: input, shape index: {}]   ;;  %s2768_s4 = inlined_call_operand.hbm [shape: bf16[32,32], index: 4, kind: input, shape index: {}]   ;;  %s2769_s5 = inlined_call_operand.vmem [shape: bf16[32,32], index: 5, kind: input, shape index: {}]   ;;  %s2770_s6 = inlined_call_operand.hbm [shape: bf16[32,32], index: 6, kind: input, shape index: {}]   ;;  %s2771_s7 = inlined_call_operand.vmem [shape: f32[1,32], index: 7, kind: input, shape index: {}]   ;;  %s2772_s8 = inlined_call_operand.vmem [shape: f32[1,32], index: 8, kind: input, shape index: {}]   ;;  %s2773_s9 = inlined_call_operand.vmem [shape: f32[1,32], index: 9, kind: input, shape index: {}]   ;;  %s2774_s10 = inlined_call_operand.vmem [shape: f32[1,32], index: 10, kind: input, shape index: {}]   ;;  %s2775_s11 = inlined_call_operand.hbm [shape: f32[2,8,32], index: 11, kind: output, shape index: {0}]   ;;  %s2776_s12 = inlined_call_operand.hbm [shape: f32[2,4,8,8], index: 12, kind: output, shape index: {1}]  }
   0x1   :  { %2805 = sst [smem:[#allocation33_spill]] %s2765_s1 }
   0x2   :  { %2806 = sst [smem:[#allocation34_spill]] %s2767_s3 }
   0x3   :  { %2807 = sst [smem:[#allocation35_spill]] %s2771_s7 }
   0x4   :  { %2808 = sst [smem:[#allocation36_spill]] %s2772_s8 }
   0x5   :  { %2809 = sst [smem:[#allocation37_spill]] %s2773_s9 }
   0x6   :  { %2810 = sst [smem:[#allocation38_spill]] %s2774_s10 }
   0x7   :  { %2811 = sst [smem:[#allocation39_spill]] %s2775_s11 }
   0x8   :  { %2812 = sst [smem:[#allocation40_spill]] %s2776_s12 }
   0x9   :  { %18 = vsyncpa [#allocation6], 0 }
   0xa   :  { %20 = vsyncpa [#allocation6 + $0x1], 0 }
   0xb   :  { %21 = vsyncpa [#allocation9], 0 }
   0xc   :  { %23 = vsyncpa [#allocation9 + $0x1], 0 }
   0xd   :  { %24 = vsyncpa [#allocation12], 0 }
   0xe   :  { %25 = vsyncpa [#allocation15], 0 }
   0xf   :  { %26 = vsyncpa [#allocation7], 0 }
  0x10   :  { %28 = vsyncpa [#allocation7 + $0x1], 0 }
  0x11   :  { %29 = vsyncpa [#allocation18], 0 }
  0x12   :  { %31 = vsyncpa [#allocation18 + $0x1], 0  ;;  %s2275_s21 = smov 0   ;;  %s2277_s22 = smov 0  }
  0x13   :  { %s2279_s23 = smov 0   ;;  %s2281_s24 = smov 0  }
  0x14   :  { %s2283_s25 = smov 0   ;;  %s2285_s26 = smov 0  }
  0x15 LB: > { %2813 = sst [smem:[#allocation25_spill]] %s2169_s21  ;;  %s2306_s27 = sadd.s32 4294967295, %s2189_s26   ;;  %s2189_s26 = sphi %s2285_s26, %s37_s26   ;;  %s2185_s25 = sphi %s2283_s25, %s2862_s25   ;;  %s2181_s24 = sphi %s2281_s24, %s2861_s24   ;;  %s2177_s23 = sphi %s2279_s23, %s2865_s23   ;;  %s2173_s22 = sphi %s2277_s22, %s2864_s22   ;;  %s2169_s21 = sphi %s2275_s21, %s2863_s21  }
  0x16   : > { %2814 = sst [smem:[#allocation26_spill]] %s2181_s24  ;;  %s1570_s28 = sadd.s32 4294967294, %s2189_s26  }
  0x17   : > { %2815 = sst [smem:[#allocation27_spill]] %s2185_s25  ;;  %p71_p0 = scmp.ne.s32.totalorder %s2173_s22, %s2169_s21 }
  0x18   : > { %2816 = sst [smem:[#allocation28_spill]] %s2189_s26  ;;  %p2780_p1 = scmp.eq.s32.totalorder %s2306_s27, 0 }
  0x19   : > { %p323_p3 = scmp.eq.s32.totalorder %s1570_s28, 1  ;;  %p1571_p5 = scmp.ge.s32.totalorder %s2189_s26, 1 }
  0x1a   : > { %p2315_p4 = por %p2780_p1, %p71_p0  ;;  %p358_p7 = scmp.lt.s32.totalorder %s2189_s26, 3 }
  0x1b   : > { %p2320_p6 = por %p323_p3, %p71_p0  ;;  %s2191_s14 = smov [#allocation11]  }
  0x1c   : > { %s2817_s29 = scalar_select %p2315_p4, 1, 0 }
  0x1d   : > { %s2818_s30 = scalar_select %p2320_p6, 1, 0 }
  0x1e   : > { %p2325_p8 = pnand %p1571_p5, %p358_p7  ;;  %s370_s15 = sshll.u32 %s2191_s14, 4  ;;  %s371_s15 = int_to_ptr.vmem [resolvable:$true] %s370_s15 }
  0x1f   : > { %2819 = sst [smem:[#allocation29_spill]] %s2818_s30  ;;  %s49_s17 = sadd.s32 1, %s2185_s25 }
  0x20   : > { %s2820_s13 = scalar_select %p2325_p8, 1, 0 }
  0x21   : > { %p1762_p9 = pneg %p2325_p8  ;;  %s2822_s3 = sld [smem:[#allocation34_spill]] }
  0x23   : > { %p2334_p11 = pnand %p1762_p9, %p2780_p1 }
  0x25   : > { %s2821_s16 = scalar_select %p2334_p11, 1, 0 }
  0x26   : > { %p2347_p13 = pneg %p2334_p11 }
  0x27   : > { %s1889_s20 = scalar_lea.hbm %s2822_s3, 256 }
  0x28   : > { %p1890_p12 = scmp.ne.s32.totalorder %s2822_s3, %s1889_s20  ;;  %p1896_p5 = scmp.lt.u32.totalorder %s1889_s20, %s2822_s3 }
  0x29   : > { %s2823_s14 = scalar_select %p2347_p13, 1, 0 }
  0x2a   : > { %p1892_p0 = pnand %p2347_p13, %p1890_p12 }
  0x2c   : > { %p1893_p3 = pneg %p1892_p0 }
  0x2e   : > { %p1898_p7 = pnand %p1896_p5, %p1893_p3 }
  0x30   : > { %1901 = shalt.err (!%p1898_p7)
}
  0x31   : > { %s1902_s18 = scalar_lea.vmem %s371_s15, 256  ;;  %p1910_p2 = scmp.lt.s32.totalorder %s371_s15, %s371_s15 }
  0x32   : > { %p1903_p9 = scmp.ne.s32.totalorder %s371_s15, %s1902_s18  ;;  %p1911_p6 = scmp.lt.s32.totalorder %s1902_s18, %s1902_s18 }
  0x34   : > { %p1905_p10 = pnand %p1903_p9, %p2347_p13  ;;  %p1912_p4 = por %p1911_p6, %p1910_p2 }
  0x36   : > { %p1906_p1 = pneg %p1905_p10 }
  0x38   : > { %p1913_p8 = pnand %p1912_p4, %p1906_p1 }
  0x3a   : > { %1916 = shalt.err (!%p1913_p8)
}
  0x3b   : > { %s2783_s30 = smov 64   ;;  %s2785_s11 = smov 4  }
  0x3c   : > { %1765 = dma.hbm_to_vmem [thread:$0]  (!%p2334_p11), %s2822_s3, 256, %s371_s15, [#allocation12], %s2783_s30, %s2783_s30, %s2785_s11  }
  0x3d   : > { %p51_p1 = scmp.ge.s32.totalorder %s49_s17, 2  ;;  %s58_s20 = sadd.s32 1, %s2177_s23 }
  0x3e   : > { %p65_p2 = scmp.ne.s32.totalorder %s2177_s23, %s2173_s22  ;;  %p66_p4 = scmp.eq.s32.totalorder %s2189_s26, 0 }
  0x3f   : > { %s2867_s17 = smov (%p51_p1, %s49_s17), 0  ;;  %p2825_p8 = scmp.eq.s32.totalorder %s2306_s27, 1 }
  0x40   : > { %2824 = sst [smem:[#allocation30_spill]] %s2867_s17  ;;  %p67_p6 = por %p66_p4, %p65_p2 }
  0x41   : > { %p2374_p10 = por %p2825_p8, %p65_p2  ;;  %s53_s18 = ssub.s32 %s2185_s25, %s2867_s17 }
  0x42   : > { %p1792_p12 = scmp.lt.s32.totalorder %s2189_s26, 2  ;;  %p56_p0 = scmp.eq.s32.totalorder %s53_s18, 0 }
  0x43   : > { %s2826_s28 = scalar_select %p2374_p10, 1, 0 }
  0x44   : > { %s2788_s10 = sand.u32 1, %s2177_s23   ;;  %s2387_s21 = sshll.u32 %s2185_s25, 6 }
  0x45   : > { %2827 = sst [smem:[#allocation31_spill]] %s2826_s28  ;;  %s2384_s15 = sshll.u32 %s2788_s10, 2 }
  0x46   : > { %s2390_s19 = scalar_select %p56_p0, %s2177_s23, %s58_s20  }
  0x47   : > { %p2392_p3 = pnand %p1792_p12, %p67_p6  ;;  %s444_s11 = sand.u32 1, %s2189_s26  }
  0x48   : > { %2828 = sst [smem:[#allocation32_spill]] %s2390_s19  ;;  %s2830_s1 = sld [smem:[#allocation33_spill]] }
  0x49   : > { %s2829_s30 = scalar_select %p2392_p3, 1, 0 }
  0x4a   : > { %s448_s10 = scalar_lea.vmem [#allocation8], %s2384_s15  ;;  %s2194_s20 = smov [#allocation13]  }
  0x4b   : > { %s455_s25 = sshll.u32 %s448_s10, 4  ;;  %s2406_s19 = sshll.u32 %s2194_s20, 4  ;;  %s2404_s25 = int_to_ptr.vmem [resolvable:$true] %s455_s25  ;;  %s384_s19 = int_to_ptr.vmem [resolvable:$true] %s2406_s19 }
  0x4c   : > { %s2408_s12 = scalar_lea.sflag [#allocation9], %s444_s11  ;;  %p2414_p7 = pneg %p2392_p3 }
  0x4e   : > { %s2401_s18 = scalar_lea.hbm %s2830_s1, %s2387_s21  ;;  %s1922_s26 = scalar_lea.hbm %s2830_s1, 128 }
  0x4f   : > { %s1917_s28 = scalar_lea.hbm %s2401_s18, 64  ;;  %p1923_p2 = scmp.lt.u32.totalorder %s2401_s18, %s2830_s1 }
  0x50   : > { %p1918_p5 = scmp.ne.s32.totalorder %s2401_s18, %s1917_s28  ;;  %p1924_p4 = scmp.lt.u32.totalorder %s1922_s26, %s1917_s28 }
  0x51   : > { %s2831_s3 = scalar_select %p2414_p7, 1, 0 }
  0x52   : > { %p1920_p9 = pnand %p2414_p7, %p1918_p5  ;;  %p1925_p6 = por %p1924_p4, %p1923_p2 }
  0x53   : > { %p1926_p8 = scmp.lt.u32.totalorder %s1917_s28, %s2401_s18 }
  0x54   : > { %p1921_p1 = pneg %p1920_p9 }
  0x55   : > { %p1927_p12 = por %p1926_p8, %p1925_p6 }
  0x57   : > { %p1928_p0 = pnand %p1927_p12, %p1921_p1 }
  0x59   : > { %1931 = shalt.err (!%p1928_p0)
}
  0x5a   : > { %s1932_s11 = scalar_lea.vmem %s2404_s25, 64  ;;  %s2195_s17 = smov [#allocation8]  }
  0x5b   : > { %p1933_p5 = scmp.ne.s32.totalorder %s2404_s25, %s1932_s11  ;;  %s1937_s10 = sshll.u32 %s2195_s17, 4  ;;  %s1938_s10 = int_to_ptr.vmem [resolvable:$false] %s1937_s10 }
  0x5c   : > { %s1939_s24 = scalar_lea.vmem %s1938_s10, 128  ;;  %p1940_p11 = scmp.lt.s32.totalorder %s2404_s25, %s1938_s10 }
  0x5d   : > { %p1935_p9 = pnand %p1933_p5, %p2414_p7  ;;  %p1941_p13 = scmp.lt.s32.totalorder %s1939_s24, %s1932_s11 }
  0x5f   : > { %p1936_p10 = pneg %p1935_p9  ;;  %p1942_p2 = por %p1941_p13, %p1940_p11 }
  0x61   : > { %p1943_p4 = pnand %p1942_p2, %p1936_p10 }
  0x63   : > { %1946 = shalt.err (!%p1943_p4)
}
  0x64   : > { %1778 = dma.hbm_to_vmem [thread:$0]  (!%p2392_p3), %s2401_s18, 64, %s2404_s25, %s2408_s12  }
  0x65   : > { %s1947_s20 = scalar_lea.hbm %s2768_s4, 256  ;;  %p2832_p11 = scmp.ne.s32.totalorder %s2823_s14, 0 }
  0x66   : > { %p1948_p1 = scmp.ne.s32.totalorder %s2768_s4, %s1947_s20  ;;  %p1954_p6 = scmp.lt.u32.totalorder %s1947_s20, %s2768_s4 }
  0x68   : > { %p1950_p13 = pnand %p1948_p1, %p2832_p11 }
  0x6a   : > { %p1951_p10 = pneg %p1950_p13 }
  0x6c   : > { %p1956_p8 = pnand %p1954_p6, %p1951_p10 }
  0x6e   : > { %1959 = shalt.err (!%p1956_p8)
}
  0x6f   : > { %s1960_s24 = scalar_lea.vmem %s384_s19, 256  ;;  %p1968_p9 = scmp.lt.s32.totalorder %s384_s19, %s384_s19 }
  0x70   : > { %p1961_p12 = scmp.ne.s32.totalorder %s384_s19, %s1960_s24  ;;  %p1969_p2 = scmp.lt.s32.totalorder %s1960_s24, %s1960_s24 }
  0x72   : > { %p1963_p0 = pnand %p1961_p12, %p2832_p11  ;;  %p1970_p4 = por %p1969_p2, %p1968_p9 }
  0x74   : > { %p1964_p5 = pneg %p1963_p0 }
  0x76   : > { %p1971_p3 = pnand %p1970_p4, %p1964_p5 }
  0x78   : > { %1974 = shalt.err (!%p1971_p3)
}
  0x79   : > { %p2833_p1 = scmp.ne.s32.totalorder %s2821_s16, 0  ;;  %s2834_s1 = smov 4  }
  0x7a   : > { %s2835_s25 = smov 64   ;;  %s2196_s28 = smov [#allocation14]  }
  0x7b   : > { %1768 = dma.hbm_to_vmem [thread:$0]  (!%p2833_p1), %s2768_s4, 256, %s384_s19, [#allocation12], %s2835_s25, %s2835_s25, %s2834_s1  }
  0x7c   : > { %s399_s20 = sshll.u32 %s2196_s28, 4  ;;  %s1975_s10 = scalar_lea.hbm %s2770_s6, 256  ;;  %s400_s20 = int_to_ptr.vmem [resolvable:$true] %s399_s20 }
  0x7d   : > { %p1976_p3 = scmp.ne.s32.totalorder %s2770_s6, %s1975_s10  ;;  %p1982_p6 = scmp.lt.u32.totalorder %s1975_s10, %s2770_s6 }
  0x7f   : > { %p1978_p13 = pnand %p1976_p3, %p2832_p11 }
  0x81   : > { %p1979_p10 = pneg %p1978_p13 }
  0x83   : > { %p1984_p8 = pnand %p1982_p6, %p1979_p10 }
  0x85   : > { %1987 = shalt.err (!%p1984_p8)
}
  0x86   : > { %s1988_s19 = scalar_lea.vmem %s400_s20, 256  ;;  %p1996_p9 = scmp.lt.s32.totalorder %s400_s20, %s400_s20 }
  0x87   : > { %p1989_p12 = scmp.ne.s32.totalorder %s400_s20, %s1988_s19  ;;  %p1997_p2 = scmp.lt.s32.totalorder %s1988_s19, %s1988_s19 }
  0x89   : > { %p1991_p0 = pnand %p1989_p12, %p2832_p11  ;;  %p1998_p4 = por %p1997_p2, %p1996_p9 }
  0x8b   : > { %p1992_p5 = pneg %p1991_p0 }
  0x8d   : > { %p1999_p7 = pnand %p1998_p4, %p1992_p5 }
  0x8f   : > { %2002 = shalt.err (!%p1999_p7)
}
  0x90   : > { %1771 = dma.hbm_to_vmem [thread:$0]  (!%p2833_p1), %s2770_s6, 256, %s400_s20, [#allocation15], %s2835_s25, %s2835_s25, %s2834_s1  }
  0x91   : > { %s2485_s18 = scalar_lea.hbm %s2764_s0, %s2387_s21  ;;  %s429_s16 = scalar_lea.vmem [#allocation5], %s2384_s15 }
  0x92   : > { %s437_s26 = sshll.u32 %s429_s16, 4  ;;  %s2836_s28 = sand.u32 1, %s2177_s23   ;;  %s438_s26 = int_to_ptr.vmem [resolvable:$true] %s437_s26 }
  0x93   : > { %s426_s17 = scalar_lea.sflag [#allocation6], %s2836_s28  ;;  %s2003_s11 = scalar_lea.hbm %s2485_s18, 64 }
  0x94   : > { %p2004_p7 = scmp.ne.s32.totalorder %s2485_s18, %s2003_s11  ;;  %p2837_p11 = scmp.ne.s32.totalorder %s2831_s3, 0 }
  0x95   : > { %s2008_s20 = scalar_lea.hbm %s2764_s0, 128  ;;  %p2009_p1 = scmp.lt.u32.totalorder %s2485_s18, %s2764_s0 }
  0x96   : > { %p2006_p3 = pnand %p2004_p7, %p2837_p11  ;;  %p2010_p10 = scmp.lt.u32.totalorder %s2008_s20, %s2003_s11 }
  0x97   : > { %p2012_p8 = scmp.lt.u32.totalorder %s2003_s11, %s2485_s18 }
  0x98   : > { %p2007_p13 = pneg %p2006_p3  ;;  %p2011_p6 = por %p2010_p10, %p2009_p1 }
  0x9a   : > { %p2013_p12 = por %p2012_p8, %p2011_p6 }
  0x9c   : > { %p2014_p0 = pnand %p2013_p12, %p2007_p13 }
  0x9e   : > { %2017 = shalt.err (!%p2014_p0)
}
  0x9f   : > { %s2018_s19 = scalar_lea.vmem %s438_s26, 64  ;;  %s2197_s7 = smov [#allocation5]  }
  0xa0   : > { %p2019_p5 = scmp.ne.s32.totalorder %s438_s26, %s2018_s19  ;;  %s2023_s8 = sshll.u32 %s2197_s7, 4  ;;  %s2024_s8 = int_to_ptr.vmem [resolvable:$false] %s2023_s8 }
  0xa1   : > { %s2025_s9 = scalar_lea.vmem %s2024_s8, 128  ;;  %p2026_p4 = scmp.lt.s32.totalorder %s438_s26, %s2024_s8 }
  0xa2   : > { %p2021_p9 = pnand %p2019_p5, %p2837_p11  ;;  %p2027_p7 = scmp.lt.s32.totalorder %s2025_s9, %s2018_s19 }
  0xa4   : > { %p2022_p2 = pneg %p2021_p9  ;;  %p2028_p3 = por %p2027_p7, %p2026_p4 }
  0xa6   : > { %p2029_p1 = pnand %p2028_p3, %p2022_p2 }
  0xa8   : > { %2032 = shalt.err (!%p2029_p1)
}
  0xa9   : > { %p2838_p10 = scmp.ne.s32.totalorder %s2829_s30, 0  ;;  %s2511_s28 = scalar_lea.hbm %s2766_s2, %s2387_s21 }
  0xaa   : > { %s466_s11 = scalar_lea.vmem [#allocation10], %s2384_s15  ;;  %s2033_s25 = scalar_lea.hbm %s2511_s28, 64 }
  0xab   : > { %1775 = dma.hbm_to_vmem [thread:$0]  (!%p2838_p10), %s2485_s18, 64, %s438_s26, %s426_s17  }
  0xac   : > { %s473_s1 = sshll.u32 %s466_s11, 4  ;;  %p2034_p13 = scmp.ne.s32.totalorder %s2511_s28, %s2033_s25  ;;  %s474_s1 = int_to_ptr.vmem [resolvable:$true] %s473_s1 }
  0xad   : > { %s2038_s18 = scalar_lea.hbm %s2766_s2, 128  ;;  %p2039_p12 = scmp.lt.u32.totalorder %s2511_s28, %s2766_s2 }
  0xae   : > { %p2036_p6 = pnand %p2034_p13, %p2837_p11  ;;  %p2040_p0 = scmp.lt.u32.totalorder %s2038_s18, %s2033_s25 }
  0xaf   : > { %p2042_p9 = scmp.lt.u32.totalorder %s2033_s25, %s2511_s28 }
  0xb0   : > { %p2037_p8 = pneg %p2036_p6  ;;  %p2041_p5 = por %p2040_p0, %p2039_p12 }
  0xb2   : > { %p2043_p2 = por %p2042_p9, %p2041_p5 }
  0xb4   : > { %p2044_p4 = pnand %p2043_p2, %p2037_p8 }
  0xb6   : > { %2047 = shalt.err (!%p2044_p4)
}
  0xb7   : > { %s2048_s15 = scalar_lea.vmem %s474_s1, 64  ;;  %s2198_s21 = smov [#allocation10]  }
  0xb8   : > { %p2049_p7 = scmp.ne.s32.totalorder %s474_s1, %s2048_s15  ;;  %s2053_s24 = sshll.u32 %s2198_s21, 4  ;;  %s2054_s24 = int_to_ptr.vmem [resolvable:$false] %s2053_s24 }
  0xb9   : > { %s2055_s19 = scalar_lea.vmem %s2054_s24, 128  ;;  %p2056_p13 = scmp.lt.s32.totalorder %s474_s1, %s2054_s24 }
  0xba   : > { %p2051_p3 = pnand %p2049_p7, %p2837_p11  ;;  %p2057_p6 = scmp.lt.s32.totalorder %s2055_s19, %s2048_s15 }
  0xbc   : > { %p2052_p1 = pneg %p2051_p3  ;;  %p2058_p10 = por %p2057_p6, %p2056_p13 }
  0xbe   : > { %p2059_p0 = pnand %p2058_p10, %p2052_p1 }
  0xc0   : > { %2062 = shalt.err (!%p2059_p0)
}
  0xc1   : > { %p2839_p12 = scmp.ne.s32.totalorder %s2829_s30, 0  ;;  %p2840_p8 = scmp.ne.s32.totalorder %s2820_s13, 0 }
  0xc2   : > { %s2535_s3 = sand.u32 (!%p2840_p8), 1, %s2173_s22   ;;  %p2841_p11 = scmp.ne.s32.totalorder (!%p2840_p8), %s2817_s29, 0 }
  0xc3   : > { %1781 = dma.hbm_to_vmem [thread:$0]  (!%p2839_p12), %s2511_s28, 64, %s474_s1, %s2408_s12  }
  0xc4   : > { %482 = sbr.rel (%p2840_p8) target bundleno = 1683 (0x693), region = 64  ;;  %s2538_s7 = sshll.u32 (!%p2840_p8), %s2535_s3, 2 }
  0xc5   : > { %s485_s8 = scalar_lea.sflag (!%p2840_p8), [#allocation6], %s2535_s3  ;;  %s488_s9 = scalar_lea.vmem (!%p2840_p8), [#allocation5], %s2538_s7 }
  0xcb   : > { %2144 = dma.done.wait (%p2841_p11), %s485_s8, 64  }
  0xcc   : > { %2146 = vsyncadd (%p2841_p11), %s485_s8, 4294967232  ;;  %s493_s12 = sand.u32 1, %s2306_s27   ;;  %s497_s30 = scalar_lea.vmem [#allocation8], %s2538_s7 }
  0xcd   : > { %s494_s13 = scalar_lea.sflag [#allocation9], %s493_s12 }
  0xce   : > { %2148 = dma.done.wait (%p2841_p11), %s494_s13, 128  }
  0xcf   : > { %2150 = vsyncadd (%p2841_p11), %s494_s13, 4294967168  ;;  %s506_s14 = scalar_lea.vmem [#allocation10], %s2538_s7  ;;  %p2842_p10 = scmp.eq.s32.totalorder %s2306_s27, 0 }
  0xd1   : > { %2152 = dma.done.wait (%p2842_p10), [#allocation12], 512   ;;  %p2843_p5 = pmov %p2842_p10 }
  0xd3   : > { %2154 = vsyncadd (%p2843_p5), [#allocation12], 4294966784  ;;  %p2844_p9 = pmov %p2843_p5 }
  0xd4   : > { %p2845_p2 = pmov %p2843_p5 }
  0xd5   : > { %2156 = dma.done.wait (%p2844_p9), [#allocation15], 256  }
  0xd6   : > { %2158 = vsyncadd (%p2845_p2), [#allocation15], 4294967040  ;;  %v2199_v0 = vmov 0.0   ;;  %vm2200_vm0 = vmmov 0   ;;  %v1859_v1 = vld [vmem:[#allocation13] sm:$0xff]   ;;  %v1860_v2 = vld [vmem:[#allocation13 + $0x8] sm:$0xff]  }
  0xd7   : > { %1660 = vmatprep.subr.bf16.mxu0 %v2199_v0  ;;  %1664 = vmatprep.mubr.msk.bf16.mxu0 %vm2200_vm0, %v2199_v0  ;;  %v579_v3 = vld [vmem:[%s497_s30] sm:$0xf]  ;;  %vm603_vm1 = vcmask 261120   ;;  %v1861_v4 = vld [vmem:[#allocation11] sm:$0xff]   ;;  %v1862_v5 = vld [vmem:[#allocation11 + $0x8] sm:$0xff]   ;;  %s2846_s25 = sld [smem:[#allocation36_spill]] }
  0xd8   : > { %1668 = vmatprep.subr.bf16.mxu1 %v2199_v0  ;;  %1672 = vmatprep.mubr.msk.bf16.mxu1 %vm2200_vm0, %v2199_v0  ;;  %v719_v6 = vld [vmem:[%s488_s9] sm:$0xf]  ;;  %v1864_v8 = vld [vmem:[%s2769_s5 + $0x8] sm:$0xff]   ;;  %v650_v9 = vld [vmem:[%s506_s14] sm:$0xf]  ;;  %vm648_vm2 = vcmask 257024  }
  0xd9   : > { %1661 = vmatpush3.bf16.msra.mxu0 %v1859_v1  ;;  %v1863_v7 = vld [vmem:[%s2769_s5] sm:$0xff]   ;;  %s2847_s18 = sld [smem:[#allocation35_spill]]  ;;  %vm789_vm3 = vcmask 64512   ;;  %s2201_s26 = smov 112   ;;  %vm853_vm4 = vcmask 1043456   ;;  %vm1023_vm5 = vcmask 130112  }
  0xda   : > { %1662 = vmatprep.subr.bf16.mxu0 %v2199_v0  ;;  %1669 = vmatpush3.bf16.msra.mxu1 %v1863_v7  ;;  %s2202_s17 = smov 120   ;;  %s2203_s15 = smov 104   ;;  %vm1149_vm6 = vcmask 195712   ;;  %vm1275_vm7 = vcmask 261312  }
  0xdb   : > { %1670 = vmatprep.subr.bf16.mxu1 %v2199_v0  ;;  %s2848_s19 = sld [smem:[#allocation37_spill]]  ;;  %s1590_s7 = sshll.u32 %s2535_s3, 5 }
  0xdc   : > { %s2642_s8 = scalar_lea.vmem [#allocation17], %s1590_s7  ;;  %s2204_s9 = smov 8  }
  0xdd   : > { %1663 = vmatpush3.bf16.msra.mxu0 %v1860_v2  ;;  %v1591_v10 = vld [vmem:[%s2846_s25] ss:$0 sm:$0xff]  ;;  %s2205_s12 = smov 16   ;;  %s2206_s13 = smov 24  }
  0xde   : > { %1676 = vmatprep.subr.bf16.mxu0 %v2199_v0  ;;  %1671 = vmatpush3.bf16.msra.mxu1 %v1864_v8  ;;  %s2849_s30 = sld [smem:[#allocation26_spill]]  ;;  %s2850_s14 = sld [smem:[#allocation31_spill]] }
  0xdf   : > { %1684 = vmatprep.subr.bf16.mxu1 %v2199_v0  ;;  %v1599_v17 = vld [vmem:[%s2847_s18] ss:$0 sm:$0xff]  ;;  %s1380_s29 = sshll.u32 %s2642_s8, 4  ;;  %s2851_s11 = sld [smem:[#allocation40_spill]]  ;;  %s2679_s29 = int_to_ptr.vmem [resolvable:$true] %s1380_s29 }
  0xe0   : > { %1665 = vmatmul.mubr.msk.bf16.vlgmr.msra.gmra.mrb[0].mxu0 %vm603_vm1, %v579_v3  ;;  %s1352_s25 = scalar_lea.sflag [#allocation18], %s2535_s3  ;;  %s2063_s20 = scalar_lea.vmem %s2679_s29, 512 }
  0xe1   : > { %1677 = vmatpush3.bf16.msra.mxu0 %v1861_v4  ;;  %1680 = vmatprep.mubr.msk.bf16.mxu0 %vm2200_vm0, %v2199_v0  ;;  %v1595_v29 = vld [vmem:[%s2848_s19] ss:$0 sm:$0xff]  ;;  %p2064_p4 = scmp.ne.s32.totalorder %s2679_s29, %s2063_s20  ;;  %s2207_s10 = smov [#allocation17]  }
  0xe2   : > { %1678 = vmatprep.subr.bf16.mxu0 %v2199_v0  ;;  %1673 = vmatmul.mubr.msk.bf16.vlgmr.msra.gmra.mrb[0].mxu1 %vm603_vm1, %v650_v9  ;;  %s2067_s18 = sshll.u32 %s2207_s10, 4  ;;  %s2068_s18 = int_to_ptr.vmem [resolvable:$false] %s2067_s18 }
  0xe3   : > { %1686 = vmatprep.mubr.msk.bf16.mxu1 %vm2200_vm0, %v2199_v0  ;;  %p2070_p13 = scmp.lt.s32.totalorder %s2679_s29, %s2068_s18 }
  0xe4   : > { %s1631_s27 = sshll.u32 %s2849_s30, 9  ;;  %p2852_p7 = scmp.ne.s32.totalorder %s2850_s14, 0 }
  0xe5   : > { %1679 = vmatpush3.bf16.msra.mxu0 %v1862_v5  ;;  %s2677_s1 = scalar_lea.hbm %s2851_s11, %s1631_s27 }
  0xe6   : > { %1690 = vmatprep.subr.bf16.mxu0 %v2199_v0  ;;  %p2065_p3 = pnand %p2064_p4, %p2852_p7 }
  0xe8   : > { %1681 = vmatmul.mubr.msk.bf16.vlgmr.msra.gmra.mrb[4].mxu0 %vm603_vm1, %v719_v6  ;;  %p2066_p1 = pneg %p2065_p3 }
  0xe9   : > { %1692 = vmatprep.mubr.msk.bf16.mxu0 %vm2200_vm0, %v2199_v0 }
 0x1b3   : > { %v641_v11 = vpop.f32.mrb[0].mxu0 }
 0x1b4   : > { %v642_v12 = vadd.f32 %v1591_v10, %v641_v11  ;;  %v1666_v13 = vpop.f32.mrb[1].mxu0 }
 0x1b5   : > { %v644_v14 = vpop.f32.mrb[2].mxu0  ;;  %v711_v30 = vpop.f32.mrb[0].mxu1 }
 0x1b6   : > { %v647_v15 = vpack.c.bf16 %v642_v12, %v642_v12  ;;  %v1667_v16 = vpop.f32.mrb[3].mxu0  ;;  %v712_v31 = vadd.f32 %v1595_v29, %v711_v30  ;;  %v1674_v32 = vpop.f32.mrb[1].mxu1 }
 0x1b7   : > { %v714_v33 = vpop.f32.mrb[2].mxu1 }
 0x1b8   : > { %649 = vst.msk [vmem:[#allocation2] sm:$0xf] %vm648_vm2, %v647_v15  ;;  %v717_v34 = vpack.c.bf16 %v712_v31, %v712_v31  ;;  %v1675_v35 = vpop.f32.mrb[3].mxu1 }
 0x1ba   : > { %718 = vst.msk [vmem:[#allocation3] sm:$0xf] %vm648_vm2, %v717_v34 }
 0x1bb   : > { %v781_v18 = vpop.f32.mrb[4].mxu0 }
 0x1bc   : > { %v1682_v19 = vpop.f32.mrb[5].mxu0  ;;  %v782_v20 = vadd.f32 %v1599_v17, %v781_v18 }
 0x1bd   : > { %v784_v21 = vpop.f32.mrb[6].mxu0 }
 0x1be   : > { %v1683_v22 = vpop.f32.mrb[7].mxu0  ;;  %v787_v27 = vpack.c.bf16 %v782_v20, %v782_v20 }
 0x1bf   : > { %v788_v23 = vld [vmem:[#allocation2] sm:$0xf] }
 0x1c0   : > { %v1865_v24 = vld [vmem:[#allocation2] ss:$0 sps:$4 sm:$0xff]   ;;  %v794_v25 = vsel %vm789_vm3, %v788_v23, 0 }
 0x1c1   : > { %v1866_v26 = vld [vmem:[#allocation2] ss:$0 sps:$4 sm:$0xff]   ;;  %1685 = vmatpush3.bf16.xpose.msra.mxu1 %v794_v25  ;;  %1031 = vrot.lane.b32.xlu1 %v1865_v24, %s2201_s26  ;;  %v849_v36 = vld [vmem:[#allocation3] sm:$0xf] }
 0x1c2   : > { %905 = vrot.lane.b32.xlu0 %v1866_v26, %s2202_s17  ;;  %1696 = vmatprep.subr.bf16.mxu1 %v2199_v0  ;;  %v1867_v28 = vld [vmem:[#allocation2] ss:$0 sps:$4 sm:$0xff]   ;;  %v855_v37 = vsel %vm853_vm4, %v849_v36, 0  ;;  %v1868_v9 = vld [vmem:[#allocation3] ss:$0 sps:$4 sm:$0xff]  }
 0x1c3   : > { %1691 = vmatpush3.bf16.msra.mxu0 %v855_v37  ;;  %v1869_v25 = vld [vmem:[#allocation3] ss:$0 sps:$4 sm:$0xff]  }
 0x1c4   : > { %1702 = vmatprep.subr.bf16.mxu0 %v2199_v0  ;;  %v1870_v29 = vld [vmem:[#allocation3] ss:$0 sps:$4 sm:$0xff]  }
 0x1c5   : > { %1026 = vrot.lane.b32.xlu1 %v787_v27, %s2201_s26 }
 0x1c6   : > { %900 = vrot.lane.b32.xlu0 %v787_v27, %s2202_s17 }
 0x1c8   : > { %1687 = vmatmul.mubr.msk.bf16.vlgmr.msra.gmra.mrb[4].mxu1 %vm789_vm3, %v787_v27 }
 0x1c9   : > { %1152 = vrot.lane.b32.xlu1 %v787_v27, %s2203_s15  ;;  %1698 = vmatprep.mubr.msk.bf16.mxu1 %vm2200_vm0, %v2199_v0 }
 0x1ca   : > { %1157 = vrot.lane.b32.xlu0 %v1867_v28, %s2203_s15 }
 0x233   : > { %v1032_v40 = vpop.permute.xlu1 %1031 }
 0x234   : > { %v906_v38 = vpop.permute.xlu0 %905  ;;  %v1037_v42 = vsel %vm789_vm3, %v1032_v40, 0 }
 0x235   : > { %v911_v39 = vsel %vm789_vm3, %v906_v38, 0 }
 0x236   : > { %1697 = vmatpush3.bf16.xpose.msra.mxu1 %v911_v39 }
 0x237   : > { %1708 = vmatprep.subr.bf16.mxu1 %v2199_v0  ;;  %v1027_v44 = vpop.permute.xlu1 %1026 }
 0x238   : > { %v901_v41 = vpop.permute.xlu0 %900 }
 0x23b   : > { %v1153_v46 = vpop.permute.xlu1 %1152 }
 0x23c   : > { %v1158_v43 = vpop.permute.xlu0 %1157 }
 0x23d   : > { %1699 = vmatmul.mubr.msk.bf16.vlgmr.msra.gmra.mrb[8].mxu1 %vm789_vm3, %v901_v41  ;;  %v1163_v45 = vsel %vm789_vm3, %v1158_v43, 0 }
 0x23e   : > { %1709 = vmatpush3.bf16.xpose.msra.mxu1 %v1037_v42  ;;  %1710 = vmatprep.mubr.msk.bf16.mxu1 %vm2200_vm0, %v2199_v0 }
 0x23f   : > { %1720 = vmatprep.subr.bf16.mxu1 %v2199_v0 }
 0x245   : > { %1711 = vmatmul.mubr.msk.bf16.vlgmr.msra.gmra.mrb[12].mxu1 %vm789_vm3, %v1027_v44 }
 0x246   : > { %1721 = vmatpush3.bf16.xpose.msra.mxu1 %v1163_v45  ;;  %1722 = vmatprep.mubr.msk.bf16.mxu1 %vm2200_vm0, %v2199_v0 }
 0x247   : > { %1732 = vmatprep.subr.bf16.mxu1 %v2199_v0 }
 0x24d   : > { %1723 = vmatmul.mubr.msk.bf16.vlgmr.msra.gmra.mrb[16].mxu1 %vm789_vm3, %v1153_v46 }
 0x24e   : > { %1736 = vmatprep.mubr.msk.bf16.mxu1 %vm2200_vm0, %v2199_v0 }
 0x29b   : > { %v830_v47 = vpop.f32.mrb[4].mxu1 }
 0x29c   : > { %v1688_v48 = vpop.f32.mrb[5].mxu1  ;;  %v836_v49 = vsel %vm789_vm3, %v830_v47, -inf }
 0x29d   : > { %837 = vmax.xlane.f32.xlu0 %v836_v49  ;;  %v833_v50 = vpop.f32.mrb[6].mxu1 }
 0x29e   : > { %v1689_v51 = vpop.f32.mrb[7].mxu1 }
 0x310   : > { %v947_v52 = vpop.f32.mrb[8].mxu1 }
 0x311   : > { %v1700_v53 = vpop.f32.mrb[9].mxu1  ;;  %v953_v54 = vsel %vm789_vm3, %v947_v52, -inf }
 0x312   : > { %954 = vmax.xlane.f32.xlu1 %v953_v54  ;;  %v950_v55 = vpop.f32.mrb[10].mxu1 }
 0x313   : > { %v1701_v56 = vpop.f32.mrb[11].mxu1 }
 0x318   : > { %v1073_v57 = vpop.f32.mrb[12].mxu1 }
 0x319   : > { %v1712_v58 = vpop.f32.mrb[13].mxu1  ;;  %v1079_v59 = vsel %vm789_vm3, %v1073_v57, -inf }
 0x31a   : > { %1080 = vmax.xlane.f32.xlu0 %v1079_v59  ;;  %v1076_v60 = vpop.f32.mrb[14].mxu1  ;;  %v1872_v58 = vld [vmem:[#allocation14 + $0x8] sm:$0xff]  }
 0x31b   : > { %v1713_v61 = vpop.f32.mrb[15].mxu1 }
 0x320   : > { %v1199_v62 = vpop.f32.mrb[16].mxu1 }
 0x321   : > { %v1724_v63 = vpop.f32.mrb[17].mxu1  ;;  %v1205_v1 = vsel %vm789_vm3, %v1199_v62, -inf }
 0x322   : > { %1206 = vmax.xlane.f32.xlu0 %v1205_v1  ;;  %v1202_v2 = vpop.f32.mrb[18].mxu1 }
 0x323   : > { %v1725_v3 = vpop.f32.mrb[19].mxu1 }
 0x32a   : > { %v838_v4 = vpop.xlane.xlu0 %837 }
 0x32b   : > { %v839_v5 = vsub.f32 %v830_v47, %v838_v4 }
 0x32d   : > { %v840_v6 = vmul.f32 1.442695, %v839_v5 }
 0x32f   : > { %1873 = vpow2.f32 %v840_v6 }
 0x339   : > { %v1874_v7 = vpop.eup %1873 }
 0x33a   : > { %v842_v8 = vsel %vm789_vm3, %v1874_v7, 0.0 }
 0x33b   : > { %843 = vadd.xlane.f32.xlu1 %v842_v8 }
 0x34c   : > { %971 = vrot.lane.b32.xlu1 %v1868_v9, %s2202_s17 }
 0x39f   : > { %v955_v10 = vpop.xlane.xlu1 %954 }
 0x3a0   : > { %v956_v11 = vsub.f32 %v947_v52, %v955_v10 }
 0x3a2   : > { %v957_v12 = vmul.f32 1.442695, %v956_v11 }
 0x3a4   : > { %1875 = vpow2.f32 %v957_v12 }
 0x3a7   : > { %v1081_v13 = vpop.xlane.xlu0 %1080 }
 0x3a8   : > { %v1082_v14 = vsub.f32 %v1073_v57, %v1081_v13  ;;  %v1871_v57 = vld [vmem:[#allocation14] sm:$0xff]  }
 0x3a9   : > { %1733 = vmatpush3.bf16.msra.mxu1 %v1871_v57 }
 0x3aa   : > { %v1083_v15 = vmul.f32 1.442695, %v1082_v14  ;;  %1734 = vmatprep.subr.bf16.mxu1 %v2199_v0 }
 0x3ac   : > { %1877 = vpow2.f32 %v1083_v15 }
 0x3ad   : > { %1735 = vmatpush3.bf16.msra.mxu1 %v1872_v58 }
 0x3ae   : > { %v1876_v16 = vpop.eup %1875 }
 0x3af   : > { %v1207_v17 = vpop.xlane.xlu0 %1206  ;;  %v959_v18 = vsel %vm789_vm3, %v1876_v16, 0.0 }
 0x3b0   : > { %v1208_v19 = vsub.f32 %v1199_v62, %v1207_v17  ;;  %960 = vadd.xlane.f32.xlu0 %v959_v18 }
 0x3b2   : > { %v1209_v20 = vmul.f32 1.442695, %v1208_v19 }
 0x3b4   : > { %1879 = vpow2.f32 %v1209_v20 }
 0x3b6   : > { %v1878_v21 = vpop.eup %1877 }
 0x3b7   : > { %v1085_v22 = vsel %vm789_vm3, %v1878_v21, 0.0 }
 0x3b8   : > { %1086 = vadd.xlane.f32.xlu1 %v1085_v22 }
 0x3be   : > { %v1880_v23 = vpop.eup %1879 }
 0x3bf   : > { %v1211_v24 = vsel %vm789_vm3, %v1880_v23, 0.0 }
 0x3c0   : > { %1212 = vadd.xlane.f32.xlu0 %v1211_v24 }
 0x3c8   : > { %v844_v26 = vpop.xlane.xlu1 %843 }
 0x3c9   : > { %1881 = vrcp.f32 %v844_v26  ;;  %1223 = vrot.lane.b32.xlu1 %v1869_v25, %s2203_s15 }
 0x3cc   : > { %v972_v30 = vpop.permute.xlu1 %971 }
 0x3cd   : > { %v977_v32 = vsel %vm853_vm4, %v972_v30, 0 }
 0x3d3   : > { %v1882_v27 = vpop.eup %1881 }
 0x3d4   : > { %v846_v28 = vmul.f32 %v1882_v27, %v1874_v7 }
 0x3d6   : > { %847 = vst.msk [vmem:[%s2642_s8] sm:$0xff] %vm789_vm3, %v846_v28  ;;  %1097 = vrot.lane.b32.xlu0 %v1870_v29, %s2201_s26  ;;  %v848_v31 = vpack.c.bf16 %v846_v28, %v846_v28  ;;  %s2069_s26 = scalar_lea.vmem %s2068_s18, 1024 }
 0x3d7   : > { %p2071_p6 = scmp.lt.s32.totalorder %s2069_s26, %s2063_s20 }
 0x3d8   : > { %1693 = vmatmul.mubr.msk.bf16.vlgmr.msra.gmra.mrb[8].mxu0 %vm789_vm3, %v848_v31 }
 0x3d9   : > { %1703 = vmatpush3.bf16.msra.mxu0 %v977_v32  ;;  %1704 = vmatprep.mubr.msk.bf16.mxu0 %vm2200_vm0, %v2199_v0  ;;  %p2072_p0 = por %p2071_p6, %p2070_p13 }
 0x3da   : > { %1714 = vmatprep.subr.bf16.mxu0 %v2199_v0 }
 0x3db   : > { %p2073_p12 = pnand %p2072_p0, %p2066_p1 }
 0x43d   : > { %v961_v33 = vpop.xlane.xlu0 %960 }
 0x43e   : > { %1883 = vrcp.f32 %v961_v33 }
 0x445   : > { %v1087_v34 = vpop.xlane.xlu1 %1086 }
 0x446   : > { %1885 = vrcp.f32 %v1087_v34 }
 0x448   : > { %v1884_v35 = vpop.eup %1883 }
 0x449   : > { %v963_v36 = vmul.f32 %v1884_v35, %v1876_v16  ;;  %v1224_v43 = vpop.permute.xlu1 %1223 }
 0x44a   : > { %v1229_v45 = vsel %vm853_vm4, %v1224_v43, 0 }
 0x44b   : > { %1607 = vst.msk [vmem:[%s2642_s8 + $0x8] sm:$0xff] %vm789_vm3, %v963_v36  ;;  %v966_v37 = vpack.c.bf16 %v963_v36, %v963_v36 }
 0x44d   : > { %1705 = vmatmul.mubr.msk.bf16.vlgmr.msra.gmra.mrb[12].mxu0 %vm789_vm3, %v966_v37  ;;  %v1213_v38 = vpop.xlane.xlu0 %1212 }
 0x44e   : > { %1887 = vrcp.f32 %v1213_v38  ;;  %1716 = vmatprep.mubr.msk.bf16.mxu0 %vm2200_vm0, %v2199_v0 }
 0x450   : > { %v1886_v39 = vpop.eup %1885 }
 0x451   : > { %v1089_v40 = vmul.f32 %v1886_v39, %v1878_v21  ;;  %v1098_v41 = vpop.permute.xlu0 %1097 }
 0x452   : > { %v1103_v42 = vsel %vm853_vm4, %v1098_v41, 0 }
 0x453   : > { %1612 = vst.msk [vmem:[%s2642_s8 + $0x10] sm:$0xff] %vm789_vm3, %v1089_v40  ;;  %1715 = vmatpush3.bf16.msra.mxu0 %v1103_v42  ;;  %v1092_v44 = vpack.c.bf16 %v1089_v40, %v1089_v40 }
 0x454   : > { %1726 = vmatprep.subr.bf16.mxu0 %v2199_v0 }
 0x456   : > { %1717 = vmatmul.mubr.msk.bf16.vlgmr.msra.gmra.mrb[16].mxu0 %vm789_vm3, %v1092_v44 }
 0x457   : > { %1727 = vmatpush3.bf16.msra.mxu0 %v1229_v45  ;;  %1728 = vmatprep.mubr.msk.bf16.mxu0 %vm2200_vm0, %v2199_v0 }
 0x458   : > { %v1888_v46 = vpop.eup %1887 }
 0x459   : > { %v1215_v47 = vmul.f32 %v1888_v46, %v1880_v23 }
 0x45b   : > { %1617 = vst.msk [vmem:[%s2642_s8 + $0x18] sm:$0xff] %vm789_vm3, %v1215_v47  ;;  %v1218_v48 = vpack.c.bf16 %v1215_v47, %v1215_v47 }
 0x45e   : > { %1729 = vmatmul.mubr.msk.bf16.vlgmr.msra.gmra.mrb[20].mxu0 %vm789_vm3, %v1218_v48 }
 0x4ab   : > { %v891_v49 = vpop.f32.mrb[8].mxu0 }
 0x4ac   : > { %897 = vst.msk [vmem:[#allocation4] sm:$0xff] %vm789_vm3, %v891_v49  ;;  %v1694_v50 = vpop.f32.mrb[9].mxu0 }
 0x4ad   : > { %v894_v51 = vpop.f32.mrb[10].mxu0 }
 0x4ae   : > { %v1695_v52 = vpop.f32.mrb[11].mxu0 }
 0x520   : > { %v1013_v53 = vpop.f32.mrb[12].mxu0 }
 0x521   : > { %1020 = vrot.lane.b32.xlu1 %v1013_v53, %s2204_s9  ;;  %v1706_v54 = vpop.f32.mrb[13].mxu0 }
 0x522   : > { %v1016_v55 = vpop.f32.mrb[14].mxu0 }
 0x523   : > { %v1707_v56 = vpop.f32.mrb[15].mxu0 }
 0x529   : > { %v1139_v59 = vpop.f32.mrb[16].mxu0 }
 0x52a   : > { %1146 = vrot.lane.b32.xlu0 %v1139_v59, %s2205_s12  ;;  %v1718_v60 = vpop.f32.mrb[17].mxu0 }
 0x52b   : > { %v1142_v61 = vpop.f32.mrb[18].mxu0 }
 0x52c   : > { %v1719_v62 = vpop.f32.mrb[19].mxu0 }
 0x531   : > { %v1265_v63 = vpop.f32.mrb[20].mxu0 }
 0x532   : > { %1272 = vrot.lane.b32.xlu1 %v1265_v63, %s2206_s13  ;;  %v1730_v1 = vpop.f32.mrb[21].mxu0 }
 0x533   : > { %v1268_v2 = vpop.f32.mrb[22].mxu0 }
 0x534   : > { %v1731_v3 = vpop.f32.mrb[23].mxu0 }
 0x593   : > { %v1021_v4 = vpop.permute.xlu1 %1020 }
 0x594   : > { %1024 = vst.msk [vmem:[#allocation4] sm:$0xff] %vm1023_vm5, %v1021_v4 }
 0x59c   : > { %v1147_v0 = vpop.permute.xlu0 %1146 }
 0x59d   : > { %1150 = vst.msk [vmem:[#allocation4] sm:$0xff] %vm1149_vm6, %v1147_v0 }
 0x5a4   : > { %v1273_v5 = vpop.permute.xlu1 %1272 }
 0x5a5   : > { %1276 = vst.msk [vmem:[#allocation4] sm:$0xff] %vm1275_vm7, %v1273_v5 }
 0x5ac   : > { %v1277_v6 = vld [vmem:[#allocation4] sm:$0xff] }
 0x5ad   : > { %v1278_v7 = vpack.c.bf16 %v1277_v6, %v1277_v6 }
 0x5af   : > { %1737 = vmatmul.mubr.msk.bf16.vlgmr.msra.gmra.mrb[20].mxu1 %vm603_vm1, %v1278_v7 }
 0x5b0   : > { %2076 = shalt.err (!%p2073_p12)
}
 0x5b1   : > { %s2077_s17 = scalar_lea.hbm %s2677_s1, 512  ;;  %s2081_s24 = scalar_lea.hbm %s2851_s11, 1024 }
 0x5b2   : > { %p2078_p8 = scmp.ne.s32.totalorder %s2677_s1, %s2077_s17  ;;  %p2082_p5 = scmp.lt.u32.totalorder %s2677_s1, %s2851_s11 }
 0x5b3   : > { %p2083_p9 = scmp.lt.u32.totalorder %s2081_s24, %s2077_s17  ;;  %p2085_p4 = scmp.lt.u32.totalorder %s2077_s17, %s2677_s1 }
 0x5b4   : > { %p2079_p11 = pnand %p2078_p8, %p2852_p7 }
 0x5b5   : > { %p2084_p2 = por %p2083_p9, %p2082_p5 }
 0x5b6   : > { %p2080_p10 = pneg %p2079_p11 }
 0x5b7   : > { %p2086_p3 = por %p2085_p4, %p2084_p2 }
 0x5b9   : > { %p2087_p1 = pnand %p2086_p3, %p2080_p10 }
 0x5bb   : > { %2090 = shalt.err (!%p2087_p1)
}
 0x5bc   : > { %s2208_s8 = smov 128   ;;  %s1589_s12 = sshll.u32 %s2535_s3, 3 }
 0x5bd   : > { %1759 = dma.vmem_to_hbm [thread:$0]  (%p2852_p7), %s2679_s29, 512, %s2677_s1, %s1352_s25, %s2208_s8, %s2208_s8, %s2204_s9  }
 0x5be   : > { %s2853_s16 = sld [smem:[#allocation38_spill]]  ;;  %s1626_s28 = sshll.u32 %s2849_s30, 7 }
 0x5bf   : > { %s566_s20 = scalar_lea.vmem [#allocation16], %s1589_s12  ;;  %s2854_s17 = sld [smem:[#allocation39_spill]] }
 0x5c0   : > { %s1366_s10 = sshll.u32 %s566_s20, 4  ;;  %s1347_s9 = scalar_lea.sflag [#allocation7], %s2535_s3  ;;  %s2716_s10 = int_to_ptr.vmem [resolvable:$true] %s1366_s10 }
 0x5c1   : > { %s2091_s30 = scalar_lea.vmem %s2716_s10, 128  ;;  %s2209_s29 = smov [#allocation16]  }
 0x5c2   : > { %p2092_p13 = scmp.ne.s32.totalorder %s2716_s10, %s2091_s30  ;;  %s2095_s1 = sshll.u32 %s2209_s29, 4  ;;  %s2096_s1 = int_to_ptr.vmem [resolvable:$false] %s2095_s1 }
 0x5c3   : > { %s2097_s25 = scalar_lea.vmem %s2096_s1, 256  ;;  %p2098_p12 = scmp.lt.s32.totalorder %s2716_s10, %s2096_s1 }
 0x5c4   : > { %v1620_v8 = vld [vmem:[%s2853_s16] ss:$0 sm:$0xff]  ;;  %p2093_p6 = pnand %p2092_p13, %p2852_p7  ;;  %p2099_p8 = scmp.lt.s32.totalorder %s2097_s25, %s2091_s30 }
 0x5c5   : > { %s2714_s15 = scalar_lea.hbm %s2854_s17, %s1626_s28 }
 0x5c6   : > { %p2094_p0 = pneg %p2093_p6  ;;  %p2100_p11 = por %p2099_p8, %p2098_p12 }
 0x5c8   : > { %p2101_p10 = pnand %p2100_p11, %p2094_p0 }
 0x682   : > { %v1339_v9 = vpop.f32.mrb[20].mxu1 }
 0x683   : > { %v1340_v10 = vadd.f32 %v1620_v8, %v1339_v9  ;;  %v1738_v11 = vpop.f32.mrb[21].mxu1 }
 0x684   : > { %v1342_v12 = vpop.f32.mrb[22].mxu1 }
 0x685   : > { %v1739_v13 = vpop.f32.mrb[23].mxu1  ;;  %1345 = vst.msk [vmem:[%s566_s20] sm:$0xff] %vm603_vm1, %v1340_v10 }
 0x686   : > { %2104 = shalt.err (!%p2101_p10)
}
 0x687   : > { %s2105_s3 = scalar_lea.hbm %s2714_s15, 128  ;;  %s2109_s19 = scalar_lea.hbm %s2854_s17, 256 }
 0x688   : > { %p2106_p5 = scmp.ne.s32.totalorder %s2714_s15, %s2105_s3  ;;  %p2110_p4 = scmp.lt.u32.totalorder %s2714_s15, %s2854_s17 }
 0x689   : > { %p2111_p3 = scmp.lt.u32.totalorder %s2109_s19, %s2105_s3  ;;  %p2113_p13 = scmp.lt.u32.totalorder %s2105_s3, %s2714_s15 }
 0x68a   : > { %p2107_p9 = pnand %p2106_p5, %p2852_p7 }
 0x68b   : > { %p2112_p1 = por %p2111_p3, %p2110_p4 }
 0x68c   : > { %p2108_p2 = pneg %p2107_p9 }
 0x68d   : > { %p2114_p6 = por %p2113_p13, %p2112_p1 }
 0x68f   : > { %p2115_p0 = pnand %p2114_p6, %p2108_p2 }
 0x691   : > { %2118 = shalt.err (!%p2115_p0)
}
 0x692   : > { %1758 = dma.vmem_to_hbm [thread:$0]  (%p2852_p7), %s2716_s10, 128, %s2714_s15, %s1347_s9  }
 0x693 PF: > { %s2855_s12 = sld [smem:[#allocation25_spill]]  ;;  %s2856_s13 = sld [smem:[#allocation29_spill]] }
 0x694   : > { %s2857_s27 = sld [smem:[#allocation28_spill]] }
 0x699   : > { %s1395_s16 = sand.u32 1, %s2855_s12   ;;  %p2858_p12 = scmp.ne.s32.totalorder %s2856_s13, 0 }
 0x69a   : > { %p2859_p8 = scmp.ge.s32.totalorder %s2857_s27, 2  ;;  %s1396_s28 = scalar_lea.sflag [#allocation7], %s1395_s16 }
 0x69c   : > { %p1783_p11 = pnand %p2859_p8, %p2858_p12 }
 0x69e   : > { %2160 = dma.done.wait (!%p1783_p11), %s1396_s28, 128  }
 0x69f   : > { %2162 = vsyncadd (!%p1783_p11), %s1396_s28, 4294967168  ;;  %s1405_s20 = scalar_lea.sflag [#allocation18], %s1395_s16 }
 0x6a0   : > { %2164 = dma.done.wait (!%p1783_p11), %s1405_s20, 512  }
 0x6a1   : > { %2166 = vsyncadd (!%p1783_p11), %s1405_s20, 4294966784  ;;  %s37_s26 = sadd.s32 1, %s2857_s27   ;;  %s2860_s14 = sld [smem:[#allocation32_spill]] }
 0x6a2   : > { %p34_p10 = scmp.ge.s32.totalorder %s37_s26, 4   ;;  %s2861_s24 = sld [smem:[#allocation27_spill]] }
 0x6a3   : > { %s2862_s25 = sld [smem:[#allocation30_spill]]  ;;  %s2863_s21 = smov %s2173_s22 }
 0x6a4   : > { %s2864_s22 = smov %s2177_s23  ;;  %36 = sbr.rel (!%p34_p10) target bundleno = 21 (0x15), region = 169 }
 0x6a7   : > { %s2865_s23 = smov %s2860_s14 }
 0x6ab   :  { %1410 = vsyncpa [#allocation6], 1 }
 0x6ac   :  { %1412 = vsyncpa [#allocation6 + $0x1], 1 }
 0x6ad   :  { %1413 = vsyncpa [#allocation9], 1 }
 0x6ae   :  { %1415 = vsyncpa [#allocation9 + $0x1], 1 }
 0x6af   :  { %1416 = vsyncpa [#allocation12], 1 }
 0x6b0   :  { %1417 = vsyncpa [#allocation15], 1 }
 0x6b1   :  { %1418 = vsyncpa [#allocation7], 1 }
 0x6b2   :  { %1420 = vsyncpa [#allocation7 + $0x1], 1 }
 0x6b3   :  { %1421 = vsyncpa [#allocation18], 1 }
 0x6b4   :  { %1423 = vsyncpa [#allocation18 + $0x1], 1 }

</bundles_post_ra>
